<compile_context>
chip_gen: v7x
topology: tpu7x:2x2x1
jax: 0.10.0
libtpu: 0.0.40
codegen_flags: <defaults>
</compile_context>

<pallas_src>
import math
import functools

import jax
import jax.numpy as jnp
from jax.experimental import pallas as pl
from jax.experimental.pallas import tpu as pltpu

# ---- bert-tiny config -------------------------------------------------------
HIDDEN = 128
N_HEADS = 2
HEAD_DIM = HIDDEN // N_HEADS          # 64
INTERMEDIATE = 512
N_LAYERS = 2
LN_EPS = 1e-12
PAD_OUT = 128                          # lane-dense classifier output width
_INV_SQRT_HD = 1.0 / math.sqrt(HEAD_DIM)
_INV_SQRT2 = 0.7071067811865476


def _layer_norm(x, g, b):
    mean = jnp.mean(x, axis=-1, keepdims=True)
    var = jnp.mean(jnp.square(x - mean), axis=-1, keepdims=True)
    return (x - mean) * jax.lax.rsqrt(var + LN_EPS) * g + b


def _gelu(x):  # exact (erf) GELU, as in HF BERT hidden_act="gelu"
    return 0.5 * x * (1.0 + jax.lax.erf(x * _INV_SQRT2))


# ---- the fused kernel: Bt sequences per grid step ---------------------------

def _bert_tiny_kernel(emb_ref, mask_ref,
                      eg_ref, eb_ref,
                      wqkv_ref, bqkv_ref, wao_ref, bao_ref,
                      ln1g_ref, ln1b_ref,
                      wi_ref, bi_ref, wo2_ref, bo2_ref,
                      ln2g_ref, ln2b_ref,
                      poolw_ref, poolb_ref, outw_ref, outb_ref,
                      o_ref):
    Bt, S, _ = emb_ref.shape

    # --- embeddings LayerNorm (word+pos+type already summed outside) ---
    h = emb_ref[...].astype(jnp.float32).reshape(Bt * S, HIDDEN)
    h = _layer_norm(h, eg_ref[...], eb_ref[...])                  # (Bt*S, 128)

    # --- additive attention-mask bias, (Bt, 1, S) (broadcasts over queries) ---
    bias = (1.0 - mask_ref[...]) * -10000.0

    # --- 2 transformer encoder layers (static unroll) ---
    for l in range(N_LAYERS):
        # fused QKV projection over all Bt*S rows: (Bt*S,128) @ (128,384) bf16
        qkv = jnp.dot(h.astype(jnp.bfloat16), wqkv_ref[l],
                      preferred_element_type=jnp.float32) + bqkv_ref[l]
        q3 = qkv[:, 0 * HIDDEN:1 * HIDDEN].reshape(Bt, S, HIDDEN)
        k3 = qkv[:, 1 * HIDDEN:2 * HIDDEN].reshape(Bt, S, HIDDEN)
        v3 = qkv[:, 2 * HIDDEN:3 * HIDDEN].reshape(Bt, S, HIDDEN)

        wao_l = wao_ref[l]                                        # (128,128) bf16
        a = None
        for head in range(N_HEADS):
            lo, hi = head * HEAD_DIM, (head + 1) * HEAD_DIM
            qh = q3[:, :, lo:hi].astype(jnp.bfloat16)
            kh = k3[:, :, lo:hi].astype(jnp.bfloat16)
            vh = v3[:, :, lo:hi].astype(jnp.bfloat16)
            # 1/sqrt(head_dim) already folded into Q weights/bias at prep time.
            s = jnp.einsum('bqd,bkd->bqk', qh, kh,
                           preferred_element_type=jnp.float32) + bias
            s = s - jnp.max(s, axis=-1, keepdims=True)
            p = jnp.exp(s)
            p = p * pl.reciprocal(jnp.sum(p, axis=-1, keepdims=True),
                                  approx=True)
            ctx = jnp.einsum('bqk,bkd->bqd', p.astype(jnp.bfloat16), vh,
                             preferred_element_type=jnp.float32)  # (Bt,S,64)
            # per-head partial output projection: no 64-lane concat needed.
            part = jnp.dot(ctx.reshape(Bt * S, HEAD_DIM).astype(jnp.bfloat16),
                           wao_l[lo:hi, :],
                           preferred_element_type=jnp.float32)
            a = part if a is None else a + part
        a = a + bao_ref[l]
        # TODO(synk): attention/hidden dropout is identity (eval mode).
        h = _layer_norm(h + a, ln1g_ref[l], ln1b_ref[l])

        f = jnp.dot(h.astype(jnp.bfloat16), wi_ref[l],
                    preferred_element_type=jnp.float32) + bi_ref[l]
        f = _gelu(f)
        f = jnp.dot(f.astype(jnp.bfloat16), wo2_ref[l],
                    preferred_element_type=jnp.float32) + bo2_ref[l]
        h = _layer_norm(h + f, ln2g_ref[l], ln2b_ref[l])

    # --- pooler + classifier, ONCE per batch block on the CLS rows ---
    cls = h.reshape(Bt, S, HIDDEN)[:, 0, :]                        # (Bt, 128)
    pooled = jnp.tanh(jnp.dot(cls.astype(jnp.bfloat16), poolw_ref[...],
                              preferred_element_type=jnp.float32)
                      + poolb_ref[...])
    # TODO(synk): self.bert_drop (nn.Dropout) is identity in eval/inference.
    logits = jnp.dot(pooled.astype(jnp.bfloat16), outw_ref[...],
                     preferred_element_type=jnp.float32) + outb_ref[...]
    o_ref[0] = logits.astype(o_ref.dtype)                          # (Bt, 128)


# ---- batch-block sizing ------------------------------------------------------

def _choose_block_batch(B, S):
    bt = 8
    # Per-step f32 activation footprint ~ Bt*S*2.5KB (h + FFN intermediate)
    # + 4*S*S (scores): stay well inside v5e's 16 MiB scoped-VMEM default
    # (weights + double-buffered emb blocks take the rest).
    while bt > 1 and bt * S * 2560 + 4 * S * S > (8 << 20):
        bt //= 2
    if B > 1:                       # keep >= 2 grid steps for megacore sharding
        bt = min(bt, -(-B // 2))
    return max(1, min(bt, B))


# ---- wrapper: one pallas_call for the whole forward --------------------------

def model_forward(kp, input_ids, token_type_ids, attention_mask, *,
                  out_features):
    B, S = input_ids.shape
    L = N_LAYERS
    Bt = _choose_block_batch(B, S)
    NB = -(-B // Bt)
    Bp = NB * Bt

    # Embedding gathers are plain-JAX glue; emb ships to the kernel in bf16.
    emb = (kp["word_emb"][input_ids]
           + kp["pos_emb"][jnp.arange(S)][None, :, :]
           + kp["type_emb"][token_type_ids]).astype(jnp.bfloat16)  # (B,S,128)
    mask = attention_mask.astype(jnp.float32).reshape(B, 1, S)
    if Bp != B:                                    # pad batch to a whole block
        emb = jnp.pad(emb, ((0, Bp - B), (0, 0), (0, 0)))
        mask = jnp.pad(mask, ((0, Bp - B), (0, 0), (0, 0)))

    full2 = lambda b: (0, 0)
    full3 = lambda b: (0, 0, 0)

    out = pl.pallas_call(
        _bert_tiny_kernel,
        out_shape=jax.ShapeDtypeStruct((NB, Bt, PAD_OUT), jnp.float32),
        grid=(NB,),
        in_specs=[
            pl.BlockSpec((Bt, S, HIDDEN), lambda b: (b, 0, 0)),   # emb (bf16)
            pl.BlockSpec((Bt, 1, S), lambda b: (b, 0, 0)),        # mask
            pl.BlockSpec((1, HIDDEN), full2),                     # emb_ln_g
            pl.BlockSpec((1, HIDDEN), full2),                     # emb_ln_b
            pl.BlockSpec((L, HIDDEN, 3 * HIDDEN), full3),         # wqkv (bf16)
            pl.BlockSpec((L, 1, 3 * HIDDEN), full3),              # bqkv
            pl.BlockSpec((L, HIDDEN, HIDDEN), full3),             # wao (bf16)
            pl.BlockSpec((L, 1, HIDDEN), full3),                  # bao
            pl.BlockSpec((L, 1, HIDDEN), full3),                  # ln1_g
            pl.BlockSpec((L, 1, HIDDEN), full3),                  # ln1_b
            pl.BlockSpec((L, HIDDEN, INTERMEDIATE), full3),       # wi (bf16)
            pl.BlockSpec((L, 1, INTERMEDIATE), full3),            # bi
            pl.BlockSpec((L, INTERMEDIATE, HIDDEN), full3),       # wo2 (bf16)
            pl.BlockSpec((L, 1, HIDDEN), full3),                  # bo2
            pl.BlockSpec((L, 1, HIDDEN), full3),                  # ln2_g
            pl.BlockSpec((L, 1, HIDDEN), full3),                  # ln2_b
            pl.BlockSpec((HIDDEN, HIDDEN), full2),                # pool_w (bf16)
            pl.BlockSpec((1, HIDDEN), full2),                     # pool_b
            pl.BlockSpec((HIDDEN, PAD_OUT), full2),               # out_w (bf16, padded)
            pl.BlockSpec((1, PAD_OUT), full2),                    # out_b (padded)
        ],
        out_specs=pl.BlockSpec((1, Bt, PAD_OUT), lambda b: (b, 0, 0)),
        compiler_params=pltpu.CompilerParams(
            dimension_semantics=("parallel",)),
    )(emb, mask,
      kp["emb_ln_g"], kp["emb_ln_b"],
      kp["wqkv"], kp["bqkv"], kp["wao"], kp["bao"],
      kp["ln1_g"], kp["ln1_b"], kp["wi"], kp["bi"],
      kp["wo2"], kp["bo2"], kp["ln2_g"], kp["ln2_b"],
      kp["pool_w"], kp["pool_b"],
      kp["out_w_pad"], kp["out_b_pad"])

    # drop the batch padding and the lane padding of the classifier head
    return out.reshape(Bp, PAD_OUT)[:B, :out_features]


# ---- parameter init (deterministic, synthetic — no checkpoint load) ---------

def init_params(key, vocab_size, max_pos, type_vocab, out_features):
    ks = iter(jax.random.split(key, 32))

    def nrm(shape):
        return 0.02 * jax.random.normal(next(ks), shape, dtype=jnp.float32)

    L = N_LAYERS
    return {
        "word_emb": nrm((vocab_size, HIDDEN)),
        "pos_emb": nrm((max_pos, HIDDEN)),
        "type_emb": nrm((type_vocab, HIDDEN)),
        "emb_ln_g": 1.0 + nrm((1, HIDDEN)),
        "emb_ln_b": nrm((1, HIDDEN)),
        # fused QKV: [wq | wk | wv] along the output axis, stored [in, out]
        "wqkv": nrm((L, HIDDEN, 3 * HIDDEN)),
        "bqkv": nrm((L, 1, 3 * HIDDEN)),
        "wao": nrm((L, HIDDEN, HIDDEN)),
        "bao": nrm((L, 1, HIDDEN)),
        "ln1_g": 1.0 + nrm((L, 1, HIDDEN)),
        "ln1_b": nrm((L, 1, HIDDEN)),
        "wi": nrm((L, HIDDEN, INTERMEDIATE)),
        "bi": nrm((L, 1, INTERMEDIATE)),
        "wo2": nrm((L, INTERMEDIATE, HIDDEN)),
        "bo2": nrm((L, 1, HIDDEN)),
        "ln2_g": 1.0 + nrm((L, 1, HIDDEN)),
        "ln2_b": nrm((L, 1, HIDDEN)),
        "pool_w": nrm((HIDDEN, HIDDEN)),
        "pool_b": nrm((1, HIDDEN)),
        "out_w": nrm((HIDDEN, out_features)),   # self.out = nn.Linear(128, out)
        "out_b": nrm((1, out_features)),
    }


def prepare_kernel_params(p, out_features):
    """bf16 matmul weights, 1/sqrt(hd) folded into Q, padded classifier head."""
    bf = jnp.bfloat16
    wqkv = p["wqkv"].at[:, :, :HIDDEN].multiply(_INV_SQRT_HD)
    bqkv = p["bqkv"].at[:, :, :HIDDEN].multiply(_INV_SQRT_HD)
    return dict(
        word_emb=p["word_emb"], pos_emb=p["pos_emb"], type_emb=p["type_emb"],
        emb_ln_g=p["emb_ln_g"], emb_ln_b=p["emb_ln_b"],
        wqkv=wqkv.astype(bf), bqkv=bqkv,
        wao=p["wao"].astype(bf), bao=p["bao"],
        ln1_g=p["ln1_g"], ln1_b=p["ln1_b"],
        wi=p["wi"].astype(bf), bi=p["bi"],
        wo2=p["wo2"].astype(bf), bo2=p["bo2"],
        ln2_g=p["ln2_g"], ln2_b=p["ln2_b"],
        pool_w=p["pool_w"].astype(bf), pool_b=p["pool_b"],
        out_w_pad=jnp.pad(p["out_w"],
                          ((0, 0), (0, PAD_OUT - out_features))).astype(bf),
        out_b_pad=jnp.pad(p["out_b"], ((0, 0), (0, PAD_OUT - out_features))),
    )


# ---- pure-JAX f32 reference (for a numerical sanity check) ------------------

def reference_forward(params, input_ids, token_type_ids, attention_mask):
    B, S = input_ids.shape
    h = (params["word_emb"][input_ids]
         + params["pos_emb"][jnp.arange(S)][None, :, :]
         + params["type_emb"][token_type_ids])

    def ln(x, g, b):
        m = jnp.mean(x, axis=-1, keepdims=True)
        v = jnp.mean(jnp.square(x - m), axis=-1, keepdims=True)
        return (x - m) * jax.lax.rsqrt(v + LN_EPS) * g + b

    h = ln(h, params["emb_ln_g"], params["emb_ln_b"])
    bias = ((1.0 - attention_mask.astype(jnp.float32)) * -10000.0)[:, None, None, :]

    def heads(t):
        return t.reshape(B, S, N_HEADS, HEAD_DIM).transpose(0, 2, 1, 3)

    for l in range(N_LAYERS):
        qkv = h @ params["wqkv"][l] + params["bqkv"][l]
        q, k, v = jnp.split(qkv, 3, axis=-1)
        s = jnp.einsum("bhqd,bhkd->bhqk", heads(q), heads(k)) * _INV_SQRT_HD
        p = jax.nn.softmax(s + bias, axis=-1)
        ctx = jnp.einsum("bhqk,bhkd->bhqd", p, heads(v))
        ctx = ctx.transpose(0, 2, 1, 3).reshape(B, S, HIDDEN)
        a = ctx @ params["wao"][l] + params["bao"][l]
        h = ln(h + a, params["ln1_g"][l], params["ln1_b"][l])
        f = h @ params["wi"][l] + params["bi"][l]
        f = 0.5 * f * (1.0 + jax.lax.erf(f * _INV_SQRT2))
        f = f @ params["wo2"][l] + params["bo2"][l]
        h = ln(h + f, params["ln2_g"][l], params["ln2_b"][l])

    pooled = jnp.tanh(h[:, 0, :] @ params["pool_w"] + params["pool_b"])
    return pooled @ params["out_w"] + params["out_b"]


if __name__ == "__main__":
    key = jax.random.PRNGKey(0)
    k_param, k_ids1, k_ids2 = jax.random.split(key, 3)

    VOCAB, MAX_POS, TYPE_VOCAB = 512, 32, 2
    OUT_FEATURES = 4

    params = init_params(k_param, VOCAB, MAX_POS, TYPE_VOCAB, OUT_FEATURES)
    kparams = prepare_kernel_params(params, OUT_FEATURES)

    fwd = jax.jit(functools.partial(model_forward, out_features=OUT_FEATURES))

    # Tolerance reflects bf16 matmul operands (f32 accumulation) vs all-f32 ref.
    TOL = dict(atol=2e-2, rtol=2e-2)

    # case 1: B=2, S=8  (Bt=1 per step, 2 grid steps)
    B, S = 2, 8
    input_ids = jax.random.randint(k_ids1, (B, S), 0, VOCAB, dtype=jnp.int32)
    token_type_ids = jnp.zeros((B, S), jnp.int32)
    attention_mask = jnp.ones((B, S), jnp.int32).at[1, 6:].set(0)
    out = jax.block_until_ready(
        fwd(kparams, input_ids, token_type_ids, attention_mask))
    assert out.shape == (B, OUT_FEATURES) and out.dtype == jnp.float32
    ref = reference_forward(params, input_ids, token_type_ids, attention_mask)
    assert jnp.allclose(out, ref, **TOL), (
        "case1 max abs diff %s" % jnp.max(jnp.abs(out - ref)))

    # case 2: B=5, S=16  (Bt=3 sequences per grid step, padded batch block)
    B, S = 5, 16
    input_ids = jax.random.randint(k_ids2, (B, S), 0, VOCAB, dtype=jnp.int32)
    token_type_ids = jnp.zeros((B, S), jnp.int32)
    attention_mask = (jnp.ones((B, S), jnp.int32)
                      .at[0, 12:].set(0).at[3, 5:].set(0))
    out = jax.block_until_ready(
        fwd(kparams, input_ids, token_type_ids, attention_mask))
    assert out.shape == (B, OUT_FEATURES) and out.dtype == jnp.float32
    ref = reference_forward(params, input_ids, token_type_ids, attention_mask)
    assert jnp.allclose(out, ref, **TOL), (
        "case2 max abs diff %s" % jnp.max(jnp.abs(out - ref)))

    print("KERNEL_OK")
</pallas_src>

<mosaic_0001>
module attributes {stable_mosaic.version = 11 : i64} {
  func.func @_bert_tiny_kernel(%arg0: i32, %arg1: memref<1x8x128xbf16, #tpu.memory_space<vmem>>, %arg2: memref<1x1x8xf32, #tpu.memory_space<vmem>>, %arg3: memref<1x128xf32, #tpu.memory_space<vmem>>, %arg4: memref<1x128xf32, #tpu.memory_space<vmem>>, %arg5: memref<2x128x384xbf16, #tpu.memory_space<vmem>>, %arg6: memref<2x1x384xf32, #tpu.memory_space<vmem>>, %arg7: memref<2x128x128xbf16, #tpu.memory_space<vmem>>, %arg8: memref<2x1x128xf32, #tpu.memory_space<vmem>>, %arg9: memref<2x1x128xf32, #tpu.memory_space<vmem>>, %arg10: memref<2x1x128xf32, #tpu.memory_space<vmem>>, %arg11: memref<2x128x512xbf16, #tpu.memory_space<vmem>>, %arg12: memref<2x1x512xf32, #tpu.memory_space<vmem>>, %arg13: memref<2x512x128xbf16, #tpu.memory_space<vmem>>, %arg14: memref<2x1x128xf32, #tpu.memory_space<vmem>>, %arg15: memref<2x1x128xf32, #tpu.memory_space<vmem>>, %arg16: memref<2x1x128xf32, #tpu.memory_space<vmem>>, %arg17: memref<128x128xbf16, #tpu.memory_space<vmem>>, %arg18: memref<1x128xf32, #tpu.memory_space<vmem>>, %arg19: memref<128x128xbf16, #tpu.memory_space<vmem>>, %arg20: memref<1x128xf32, #tpu.memory_space<vmem>>, %arg21: memref<1x1x128xf32, #tpu.memory_space<vmem>>) attributes {dimension_semantics = [#tpu.dimension_semantics<parallel>], iteration_bounds = array<i64: 2>, scalar_prefetch = 0 : i64, scratch_operands = 0 : i64, tpu.core_type = #tpu.core_type<tc>, window_params = [{transform_indices = @transform_0, window_bounds = array<i64: 1, 8, 128>}, {transform_indices = @transform_1, window_bounds = array<i64: 1, 1, 8>}, {pipeline_mode = #tpu.pipeline_mode<synchronous>, transform_indices = @transform_2, window_bounds = array<i64: 1, 128>}, {pipeline_mode = #tpu.pipeline_mode<synchronous>, transform_indices = @transform_3, window_bounds = array<i64: 1, 128>}, {pipeline_mode = #tpu.pipeline_mode<synchronous>, transform_indices = @transform_4, window_bounds = array<i64: 2, 128, 384>}, {pipeline_mode = #tpu.pipeline_mode<synchronous>, transform_indices = @transform_5, window_bounds = array<i64: 2, 1, 384>}, {pipeline_mode = #tpu.pipeline_mode<synchronous>, transform_indices = @transform_6, window_bounds = array<i64: 2, 128, 128>}, {pipeline_mode = #tpu.pipeline_mode<synchronous>, transform_indices = @transform_7, window_bounds = array<i64: 2, 1, 128>}, {pipeline_mode = #tpu.pipeline_mode<synchronous>, transform_indices = @transform_8, window_bounds = array<i64: 2, 1, 128>}, {pipeline_mode = #tpu.pipeline_mode<synchronous>, transform_indices = @transform_9, window_bounds = array<i64: 2, 1, 128>}, {pipeline_mode = #tpu.pipeline_mode<synchronous>, transform_indices = @transform_10, window_bounds = array<i64: 2, 128, 512>}, {pipeline_mode = #tpu.pipeline_mode<synchronous>, transform_indices = @transform_11, window_bounds = array<i64: 2, 1, 512>}, {pipeline_mode = #tpu.pipeline_mode<synchronous>, transform_indices = @transform_12, window_bounds = array<i64: 2, 512, 128>}, {pipeline_mode = #tpu.pipeline_mode<synchronous>, transform_indices = @transform_13, window_bounds = array<i64: 2, 1, 128>}, {pipeline_mode = #tpu.pipeline_mode<synchronous>, transform_indices = @transform_14, window_bounds = array<i64: 2, 1, 128>}, {pipeline_mode = #tpu.pipeline_mode<synchronous>, transform_indices = @transform_15, window_bounds = array<i64: 2, 1, 128>}, {pipeline_mode = #tpu.pipeline_mode<synchronous>, transform_indices = @transform_16, window_bounds = array<i64: 128, 128>}, {pipeline_mode = #tpu.pipeline_mode<synchronous>, transform_indices = @transform_17, window_bounds = array<i64: 1, 128>}, {pipeline_mode = #tpu.pipeline_mode<synchronous>, transform_indices = @transform_18, window_bounds = array<i64: 128, 128>}, {pipeline_mode = #tpu.pipeline_mode<synchronous>, transform_indices = @transform_19, window_bounds = array<i64: 1, 128>}, {transform_indices = @transform_20, window_bounds = array<i64: 1, 1, 128>}]} {
    %c0 = arith.constant 0 : index
    %c0_0 = arith.constant 0 : index
    %c0_1 = arith.constant 0 : index
    %0 = vector.load %arg1[%c0, %c0_0, %c0_1] : memref<1x8x128xbf16, #tpu.memory_space<vmem>>, vector<1x8x128xbf16>
    %1 = arith.extf %0 : vector<1x8x128xbf16> to vector<1x8x128xf32>
    %2 = vector.shape_cast %1 : vector<1x8x128xf32> to vector<8x128xf32>
    %c0_2 = arith.constant 0 : index
    %c0_3 = arith.constant 0 : index
    %3 = vector.load %arg3[%c0_2, %c0_3] : memref<1x128xf32, #tpu.memory_space<vmem>>, vector<1x128xf32>
    %c0_4 = arith.constant 0 : index
    %c0_5 = arith.constant 0 : index
    %4 = vector.load %arg4[%c0_4, %c0_5] : memref<1x128xf32, #tpu.memory_space<vmem>>, vector<1x128xf32>
    %cst = arith.constant dense<0.000000e+00> : vector<8xf32>
    %5 = vector.multi_reduction <add>, %2, %cst [1] : vector<8x128xf32> to vector<8xf32>
    %6 = vector.shape_cast %5 : vector<8xf32> to vector<8x1xf32>
    %cst_6 = arith.constant 1.280000e+02 : f32
    %7 = vector.broadcast %cst_6 : f32 to vector<8x1xf32>
    %8 = arith.divf %6, %7 : vector<8x1xf32>
    %9 = vector.broadcast %8 : vector<8x1xf32> to vector<8x128xf32>
    %10 = arith.subf %2, %9 : vector<8x128xf32>
    %11 = arith.mulf %10, %10 : vector<8x128xf32>
    %cst_7 = arith.constant dense<0.000000e+00> : vector<8xf32>
    %12 = vector.multi_reduction <add>, %11, %cst_7 [1] : vector<8x128xf32> to vector<8xf32>
    %13 = vector.shape_cast %12 : vector<8xf32> to vector<8x1xf32>
    %cst_8 = arith.constant 1.280000e+02 : f32
    %14 = vector.broadcast %cst_8 : f32 to vector<8x1xf32>
    %15 = arith.divf %13, %14 : vector<8x1xf32>
    %16 = vector.broadcast %8 : vector<8x1xf32> to vector<8x128xf32>
    %17 = arith.subf %2, %16 : vector<8x128xf32>
    %cst_9 = arith.constant 9.99999996E-13 : f32
    %18 = vector.broadcast %cst_9 : f32 to vector<8x1xf32>
    %19 = arith.addf %15, %18 : vector<8x1xf32>
    %20 = math.rsqrt %19 : vector<8x1xf32>
    %21 = vector.broadcast %20 : vector<8x1xf32> to vector<8x128xf32>
    %22 = arith.mulf %17, %21 : vector<8x128xf32>
    %23 = vector.broadcast %3 : vector<1x128xf32> to vector<8x128xf32>
    %24 = arith.mulf %22, %23 : vector<8x128xf32>
    %25 = vector.broadcast %4 : vector<1x128xf32> to vector<8x128xf32>
    %26 = arith.addf %24, %25 : vector<8x128xf32>
    %c0_10 = arith.constant 0 : index
    %c0_11 = arith.constant 0 : index
    %c0_12 = arith.constant 0 : index
    %27 = vector.load %arg2[%c0_10, %c0_11, %c0_12] : memref<1x1x8xf32, #tpu.memory_space<vmem>>, vector<1x1x8xf32>
    %cst_13 = arith.constant 1.000000e+00 : f32
    %28 = vector.broadcast %cst_13 : f32 to vector<1x1x8xf32>
    %29 = arith.subf %28, %27 : vector<1x1x8xf32>
    %cst_14 = arith.constant -1.000000e+04 : f32
    %30 = vector.broadcast %cst_14 : f32 to vector<1x1x8xf32>
    %31 = arith.mulf %29, %30 : vector<1x1x8xf32>
    %32 = arith.truncf %26 : vector<8x128xf32> to vector<8x128xbf16>
    %c0_15 = arith.constant 0 : index
    %c0_16 = arith.constant 0 : index
    %c0_17 = arith.constant 0 : index
    %33 = vector.load %arg5[%c0_15, %c0_16, %c0_17] : memref<2x128x384xbf16, #tpu.memory_space<vmem>>, vector<1x128x384xbf16>
    %34 = vector.shape_cast %33 : vector<1x128x384xbf16> to vector<128x384xbf16>
    %cst_18 = arith.constant dense<0.000000e+00> : vector<8x384xf32>
    %35 = tpu.matmul %32, %34, %cst_18 {dimension_numbers = #tpu.dot_dimension_numbers<[1], [0], [0], [1], [0, 0, 1, 1], [], []>} : vector<8x128xbf16>, vector<128x384xbf16>, vector<8x384xf32> -> vector<8x384xf32>
    %c0_19 = arith.constant 0 : index
    %c0_20 = arith.constant 0 : index
    %c0_21 = arith.constant 0 : index
    %36 = vector.load %arg6[%c0_19, %c0_20, %c0_21] : memref<2x1x384xf32, #tpu.memory_space<vmem>>, vector<1x1x384xf32>
    %37 = vector.shape_cast %36 : vector<1x1x384xf32> to vector<1x384xf32>
    %38 = vector.broadcast %37 : vector<1x384xf32> to vector<8x384xf32>
    %39 = arith.addf %35, %38 : vector<8x384xf32>
    %40 = vector.extract_strided_slice %39 {offsets = [0, 0], sizes = [8, 128], strides = [1, 1]} : vector<8x384xf32> to vector<8x128xf32>
    %41 = vector.shape_cast %40 : vector<8x128xf32> to vector<1x8x128xf32>
    %42 = vector.extract_strided_slice %39 {offsets = [0, 128], sizes = [8, 128], strides = [1, 1]} : vector<8x384xf32> to vector<8x128xf32>
    %43 = vector.shape_cast %42 : vector<8x128xf32> to vector<1x8x128xf32>
    %44 = vector.extract_strided_slice %39 {offsets = [0, 256], sizes = [8, 128], strides = [1, 1]} : vector<8x384xf32> to vector<8x128xf32>
    %45 = vector.shape_cast %44 : vector<8x128xf32> to vector<1x8x128xf32>
    %c0_22 = arith.constant 0 : index
    %c0_23 = arith.constant 0 : index
    %c0_24 = arith.constant 0 : index
    %46 = vector.load %arg7[%c0_22, %c0_23, %c0_24] : memref<2x128x128xbf16, #tpu.memory_space<vmem>>, vector<1x128x128xbf16>
    %47 = vector.shape_cast %46 : vector<1x128x128xbf16> to vector<128x128xbf16>
    %48 = vector.extract_strided_slice %41 {offsets = [0, 0, 0], sizes = [1, 8, 64], strides = [1, 1, 1]} : vector<1x8x128xf32> to vector<1x8x64xf32>
    %49 = arith.truncf %48 : vector<1x8x64xf32> to vector<1x8x64xbf16>
    %50 = vector.extract_strided_slice %43 {offsets = [0, 0, 0], sizes = [1, 8, 64], strides = [1, 1, 1]} : vector<1x8x128xf32> to vector<1x8x64xf32>
    %51 = arith.truncf %50 : vector<1x8x64xf32> to vector<1x8x64xbf16>
    %52 = vector.extract_strided_slice %45 {offsets = [0, 0, 0], sizes = [1, 8, 64], strides = [1, 1, 1]} : vector<1x8x128xf32> to vector<1x8x64xf32>
    %53 = arith.truncf %52 : vector<1x8x64xf32> to vector<1x8x64xbf16>
    "tpu.trace_start"() <{level = 10 : i32, message = "bqd,bkd->bqk"}> : () -> ()
    %cst_25 = arith.constant dense<0.000000e+00> : vector<1x8x8xf32>
    %54 = tpu.matmul %49, %51, %cst_25 {dimension_numbers = #tpu.dot_dimension_numbers<[2], [2], [1], [1], [0, 0, 0, 1, 1, 1], [0], [0]>} : vector<1x8x64xbf16>, vector<1x8x64xbf16>, vector<1x8x8xf32> -> vector<1x8x8xf32>
    "tpu.trace_stop"() : () -> ()
    %55 = vector.broadcast %31 : vector<1x1x8xf32> to vector<1x8x8xf32>
    %56 = arith.addf %54, %55 : vector<1x8x8xf32>
    %cst_26 = arith.constant dense<0xFF800000> : vector<1x8xf32>
    %57 = vector.multi_reduction <maximumf>, %56, %cst_26 [2] : vector<1x8x8xf32> to vector<1x8xf32>
    %58 = vector.shape_cast %57 : vector<1x8xf32> to vector<1x8x1xf32>
    %59 = vector.broadcast %58 : vector<1x8x1xf32> to vector<1x8x8xf32>
    %60 = arith.subf %56, %59 : vector<1x8x8xf32>
    %61 = math.exp %60 : vector<1x8x8xf32>
    %cst_27 = arith.constant dense<0.000000e+00> : vector<1x8xf32>
    %62 = vector.multi_reduction <add>, %61, %cst_27 [2] : vector<1x8x8xf32> to vector<1x8xf32>
    %63 = vector.shape_cast %62 : vector<1x8xf32> to vector<1x8x1xf32>
    %64 = tpu.reciprocal %63 {approx = true} : vector<1x8x1xf32> -> vector<1x8x1xf32>
    %65 = vector.broadcast %64 : vector<1x8x1xf32> to vector<1x8x8xf32>
    %66 = arith.mulf %61, %65 : vector<1x8x8xf32>
    %67 = arith.truncf %66 : vector<1x8x8xf32> to vector<1x8x8xbf16>
    "tpu.trace_start"() <{level = 10 : i32, message = "bqk,bkd->bqd"}> : () -> ()
    %cst_28 = arith.constant dense<0.000000e+00> : vector<1x8x64xf32>
    %68 = tpu.matmul %67, %53, %cst_28 {dimension_numbers = #tpu.dot_dimension_numbers<[2], [1], [1], [2], [0, 0, 0, 1, 1, 2], [0], [0]>} : vector<1x8x8xbf16>, vector<1x8x64xbf16>, vector<1x8x64xf32> -> vector<1x8x64xf32>
    "tpu.trace_stop"() : () -> ()
    %69 = vector.shape_cast %68 : vector<1x8x64xf32> to vector<8x64xf32>
    %70 = arith.truncf %69 : vector<8x64xf32> to vector<8x64xbf16>
    %71 = vector.extract_strided_slice %47 {offsets = [0, 0], sizes = [64, 128], strides = [1, 1]} : vector<128x128xbf16> to vector<64x128xbf16>
    %cst_29 = arith.constant dense<0.000000e+00> : vector<8x128xf32>
    %72 = tpu.matmul %70, %71, %cst_29 {dimension_numbers = #tpu.dot_dimension_numbers<[1], [0], [0], [1], [0, 0, 1, 1], [], []>} : vector<8x64xbf16>, vector<64x128xbf16>, vector<8x128xf32> -> vector<8x128xf32>
    %73 = vector.extract_strided_slice %41 {offsets = [0, 0, 64], sizes = [1, 8, 64], strides = [1, 1, 1]} : vector<1x8x128xf32> to vector<1x8x64xf32>
    %74 = arith.truncf %73 : vector<1x8x64xf32> to vector<1x8x64xbf16>
    %75 = vector.extract_strided_slice %43 {offsets = [0, 0, 64], sizes = [1, 8, 64], strides = [1, 1, 1]} : vector<1x8x128xf32> to vector<1x8x64xf32>
    %76 = arith.truncf %75 : vector<1x8x64xf32> to vector<1x8x64xbf16>
    %77 = vector.extract_strided_slice %45 {offsets = [0, 0, 64], sizes = [1, 8, 64], strides = [1, 1, 1]} : vector<1x8x128xf32> to vector<1x8x64xf32>
    %78 = arith.truncf %77 : vector<1x8x64xf32> to vector<1x8x64xbf16>
    "tpu.trace_start"() <{level = 10 : i32, message = "bqd,bkd->bqk"}> : () -> ()
    %cst_30 = arith.constant dense<0.000000e+00> : vector<1x8x8xf32>
    %79 = tpu.matmul %74, %76, %cst_30 {dimension_numbers = #tpu.dot_dimension_numbers<[2], [2], [1], [1], [0, 0, 0, 1, 1, 1], [0], [0]>} : vector<1x8x64xbf16>, vector<1x8x64xbf16>, vector<1x8x8xf32> -> vector<1x8x8xf32>
    "tpu.trace_stop"() : () -> ()
    %80 = vector.broadcast %31 : vector<1x1x8xf32> to vector<1x8x8xf32>
    %81 = arith.addf %79, %80 : vector<1x8x8xf32>
    %cst_31 = arith.constant dense<0xFF800000> : vector<1x8xf32>
    %82 = vector.multi_reduction <maximumf>, %81, %cst_31 [2] : vector<1x8x8xf32> to vector<1x8xf32>
    %83 = vector.shape_cast %82 : vector<1x8xf32> to vector<1x8x1xf32>
    %84 = vector.broadcast %83 : vector<1x8x1xf32> to vector<1x8x8xf32>
    %85 = arith.subf %81, %84 : vector<1x8x8xf32>
    %86 = math.exp %85 : vector<1x8x8xf32>
    %cst_32 = arith.constant dense<0.000000e+00> : vector<1x8xf32>
    %87 = vector.multi_reduction <add>, %86, %cst_32 [2] : vector<1x8x8xf32> to vector<1x8xf32>
    %88 = vector.shape_cast %87 : vector<1x8xf32> to vector<1x8x1xf32>
    %89 = tpu.reciprocal %88 {approx = true} : vector<1x8x1xf32> -> vector<1x8x1xf32>
    %90 = vector.broadcast %89 : vector<1x8x1xf32> to vector<1x8x8xf32>
    %91 = arith.mulf %86, %90 : vector<1x8x8xf32>
    %92 = arith.truncf %91 : vector<1x8x8xf32> to vector<1x8x8xbf16>
    "tpu.trace_start"() <{level = 10 : i32, message = "bqk,bkd->bqd"}> : () -> ()
    %cst_33 = arith.constant dense<0.000000e+00> : vector<1x8x64xf32>
    %93 = tpu.matmul %92, %78, %cst_33 {dimension_numbers = #tpu.dot_dimension_numbers<[2], [1], [1], [2], [0, 0, 0, 1, 1, 2], [0], [0]>} : vector<1x8x8xbf16>, vector<1x8x64xbf16>, vector<1x8x64xf32> -> vector<1x8x64xf32>
    "tpu.trace_stop"() : () -> ()
    %94 = vector.shape_cast %93 : vector<1x8x64xf32> to vector<8x64xf32>
    %95 = arith.truncf %94 : vector<8x64xf32> to vector<8x64xbf16>
    %96 = vector.extract_strided_slice %47 {offsets = [64, 0], sizes = [64, 128], strides = [1, 1]} : vector<128x128xbf16> to vector<64x128xbf16>
    %cst_34 = arith.constant dense<0.000000e+00> : vector<8x128xf32>
    %97 = tpu.matmul %95, %96, %cst_34 {dimension_numbers = #tpu.dot_dimension_numbers<[1], [0], [0], [1], [0, 0, 1, 1], [], []>} : vector<8x64xbf16>, vector<64x128xbf16>, vector<8x128xf32> -> vector<8x128xf32>
    %98 = arith.addf %72, %97 : vector<8x128xf32>
    %c0_35 = arith.constant 0 : index
    %c0_36 = arith.constant 0 : index
    %c0_37 = arith.constant 0 : index
    %99 = vector.load %arg8[%c0_35, %c0_36, %c0_37] : memref<2x1x128xf32, #tpu.memory_space<vmem>>, vector<1x1x128xf32>
    %100 = vector.shape_cast %99 : vector<1x1x128xf32> to vector<1x128xf32>
    %101 = vector.broadcast %100 : vector<1x128xf32> to vector<8x128xf32>
    %102 = arith.addf %98, %101 : vector<8x128xf32>
    %103 = arith.addf %26, %102 : vector<8x128xf32>
    %c0_38 = arith.constant 0 : index
    %c0_39 = arith.constant 0 : index
    %c0_40 = arith.constant 0 : index
    %104 = vector.load %arg9[%c0_38, %c0_39, %c0_40] : memref<2x1x128xf32, #tpu.memory_space<vmem>>, vector<1x1x128xf32>
    %105 = vector.shape_cast %104 : vector<1x1x128xf32> to vector<1x128xf32>
    %c0_41 = arith.constant 0 : index
    %c0_42 = arith.constant 0 : index
    %c0_43 = arith.constant 0 : index
    %106 = vector.load %arg10[%c0_41, %c0_42, %c0_43] : memref<2x1x128xf32, #tpu.memory_space<vmem>>, vector<1x1x128xf32>
    %107 = vector.shape_cast %106 : vector<1x1x128xf32> to vector<1x128xf32>
    %cst_44 = arith.constant dense<0.000000e+00> : vector<8xf32>
    %108 = vector.multi_reduction <add>, %103, %cst_44 [1] : vector<8x128xf32> to vector<8xf32>
    %109 = vector.shape_cast %108 : vector<8xf32> to vector<8x1xf32>
    %cst_45 = arith.constant 1.280000e+02 : f32
    %110 = vector.broadcast %cst_45 : f32 to vector<8x1xf32>
    %111 = arith.divf %109, %110 : vector<8x1xf32>
    %112 = vector.broadcast %111 : vector<8x1xf32> to vector<8x128xf32>
    %113 = arith.subf %103, %112 : vector<8x128xf32>
    %114 = arith.mulf %113, %113 : vector<8x128xf32>
    %cst_46 = arith.constant dense<0.000000e+00> : vector<8xf32>
    %115 = vector.multi_reduction <add>, %114, %cst_46 [1] : vector<8x128xf32> to vector<8xf32>
    %116 = vector.shape_cast %115 : vector<8xf32> to vector<8x1xf32>
    %cst_47 = arith.constant 1.280000e+02 : f32
    %117 = vector.broadcast %cst_47 : f32 to vector<8x1xf32>
    %118 = arith.divf %116, %117 : vector<8x1xf32>
    %119 = vector.broadcast %111 : vector<8x1xf32> to vector<8x128xf32>
    %120 = arith.subf %103, %119 : vector<8x128xf32>
    %cst_48 = arith.constant 9.99999996E-13 : f32
    %121 = vector.broadcast %cst_48 : f32 to vector<8x1xf32>
    %122 = arith.addf %118, %121 : vector<8x1xf32>
    %123 = math.rsqrt %122 : vector<8x1xf32>
    %124 = vector.broadcast %123 : vector<8x1xf32> to vector<8x128xf32>
    %125 = arith.mulf %120, %124 : vector<8x128xf32>
    %126 = vector.broadcast %105 : vector<1x128xf32> to vector<8x128xf32>
    %127 = arith.mulf %125, %126 : vector<8x128xf32>
    %128 = vector.broadcast %107 : vector<1x128xf32> to vector<8x128xf32>
    %129 = arith.addf %127, %128 : vector<8x128xf32>
    %130 = arith.truncf %129 : vector<8x128xf32> to vector<8x128xbf16>
    %c0_49 = arith.constant 0 : index
    %c0_50 = arith.constant 0 : index
    %c0_51 = arith.constant 0 : index
    %131 = vector.load %arg11[%c0_49, %c0_50, %c0_51] : memref<2x128x512xbf16, #tpu.memory_space<vmem>>, vector<1x128x512xbf16>
    %132 = vector.shape_cast %131 : vector<1x128x512xbf16> to vector<128x512xbf16>
    %cst_52 = arith.constant dense<0.000000e+00> : vector<8x512xf32>
    %133 = tpu.matmul %130, %132, %cst_52 {dimension_numbers = #tpu.dot_dimension_numbers<[1], [0], [0], [1], [0, 0, 1, 1], [], []>} : vector<8x128xbf16>, vector<128x512xbf16>, vector<8x512xf32> -> vector<8x512xf32>
    %c0_53 = arith.constant 0 : index
    %c0_54 = arith.constant 0 : index
    %c0_55 = arith.constant 0 : index
    %134 = vector.load %arg12[%c0_53, %c0_54, %c0_55] : memref<2x1x512xf32, #tpu.memory_space<vmem>>, vector<1x1x512xf32>
    %135 = vector.shape_cast %134 : vector<1x1x512xf32> to vector<1x512xf32>
    %136 = vector.broadcast %135 : vector<1x512xf32> to vector<8x512xf32>
    %137 = arith.addf %133, %136 : vector<8x512xf32>
    %cst_56 = arith.constant 5.000000e-01 : f32
    %138 = vector.broadcast %cst_56 : f32 to vector<8x512xf32>
    %139 = arith.mulf %138, %137 : vector<8x512xf32>
    %cst_57 = arith.constant 0.707106769 : f32
    %140 = vector.broadcast %cst_57 : f32 to vector<8x512xf32>
    %141 = arith.mulf %137, %140 : vector<8x512xf32>
    %142 = math.erf %141 : vector<8x512xf32>
    %cst_58 = arith.constant 1.000000e+00 : f32
    %143 = vector.broadcast %cst_58 : f32 to vector<8x512xf32>
    %144 = arith.addf %143, %142 : vector<8x512xf32>
    %145 = arith.mulf %139, %144 : vector<8x512xf32>
    %146 = arith.truncf %145 : vector<8x512xf32> to vector<8x512xbf16>
    %c0_59 = arith.constant 0 : index
    %c0_60 = arith.constant 0 : index
    %c0_61 = arith.constant 0 : index
    %147 = vector.load %arg13[%c0_59, %c0_60, %c0_61] : memref<2x512x128xbf16, #tpu.memory_space<vmem>>, vector<1x512x128xbf16>
    %148 = vector.shape_cast %147 : vector<1x512x128xbf16> to vector<512x128xbf16>
    %cst_62 = arith.constant dense<0.000000e+00> : vector<8x128xf32>
    %149 = tpu.matmul %146, %148, %cst_62 {dimension_numbers = #tpu.dot_dimension_numbers<[1], [0], [0], [1], [0, 0, 1, 1], [], []>} : vector<8x512xbf16>, vector<512x128xbf16>, vector<8x128xf32> -> vector<8x128xf32>
    %c0_63 = arith.constant 0 : index
    %c0_64 = arith.constant 0 : index
    %c0_65 = arith.constant 0 : index
    %150 = vector.load %arg14[%c0_63, %c0_64, %c0_65] : memref<2x1x128xf32, #tpu.memory_space<vmem>>, vector<1x1x128xf32>
    %151 = vector.shape_cast %150 : vector<1x1x128xf32> to vector<1x128xf32>
    %152 = vector.broadcast %151 : vector<1x128xf32> to vector<8x128xf32>
    %153 = arith.addf %149, %152 : vector<8x128xf32>
    %154 = arith.addf %129, %153 : vector<8x128xf32>
    %c0_66 = arith.constant 0 : index
    %c0_67 = arith.constant 0 : index
    %c0_68 = arith.constant 0 : index
    %155 = vector.load %arg15[%c0_66, %c0_67, %c0_68] : memref<2x1x128xf32, #tpu.memory_space<vmem>>, vector<1x1x128xf32>
    %156 = vector.shape_cast %155 : vector<1x1x128xf32> to vector<1x128xf32>
    %c0_69 = arith.constant 0 : index
    %c0_70 = arith.constant 0 : index
    %c0_71 = arith.constant 0 : index
    %157 = vector.load %arg16[%c0_69, %c0_70, %c0_71] : memref<2x1x128xf32, #tpu.memory_space<vmem>>, vector<1x1x128xf32>
    %158 = vector.shape_cast %157 : vector<1x1x128xf32> to vector<1x128xf32>
    %cst_72 = arith.constant dense<0.000000e+00> : vector<8xf32>
    %159 = vector.multi_reduction <add>, %154, %cst_72 [1] : vector<8x128xf32> to vector<8xf32>
    %160 = vector.shape_cast %159 : vector<8xf32> to vector<8x1xf32>
    %cst_73 = arith.constant 1.280000e+02 : f32
    %161 = vector.broadcast %cst_73 : f32 to vector<8x1xf32>
    %162 = arith.divf %160, %161 : vector<8x1xf32>
    %163 = vector.broadcast %162 : vector<8x1xf32> to vector<8x128xf32>
    %164 = arith.subf %154, %163 : vector<8x128xf32>
    %165 = arith.mulf %164, %164 : vector<8x128xf32>
    %cst_74 = arith.constant dense<0.000000e+00> : vector<8xf32>
    %166 = vector.multi_reduction <add>, %165, %cst_74 [1] : vector<8x128xf32> to vector<8xf32>
    %167 = vector.shape_cast %166 : vector<8xf32> to vector<8x1xf32>
    %cst_75 = arith.constant 1.280000e+02 : f32
    %168 = vector.broadcast %cst_75 : f32 to vector<8x1xf32>
    %169 = arith.divf %167, %168 : vector<8x1xf32>
    %170 = vector.broadcast %162 : vector<8x1xf32> to vector<8x128xf32>
    %171 = arith.subf %154, %170 : vector<8x128xf32>
    %cst_76 = arith.constant 9.99999996E-13 : f32
    %172 = vector.broadcast %cst_76 : f32 to vector<8x1xf32>
    %173 = arith.addf %169, %172 : vector<8x1xf32>
    %174 = math.rsqrt %173 : vector<8x1xf32>
    %175 = vector.broadcast %174 : vector<8x1xf32> to vector<8x128xf32>
    %176 = arith.mulf %171, %175 : vector<8x128xf32>
    %177 = vector.broadcast %156 : vector<1x128xf32> to vector<8x128xf32>
    %178 = arith.mulf %176, %177 : vector<8x128xf32>
    %179 = vector.broadcast %158 : vector<1x128xf32> to vector<8x128xf32>
    %180 = arith.addf %178, %179 : vector<8x128xf32>
    %181 = arith.truncf %180 : vector<8x128xf32> to vector<8x128xbf16>
    %c1 = arith.constant 1 : index
    %c0_77 = arith.constant 0 : index
    %c0_78 = arith.constant 0 : index
    %182 = vector.load %arg5[%c1, %c0_77, %c0_78] : memref<2x128x384xbf16, #tpu.memory_space<vmem>>, vector<1x128x384xbf16>
    %183 = vector.shape_cast %182 : vector<1x128x384xbf16> to vector<128x384xbf16>
    %cst_79 = arith.constant dense<0.000000e+00> : vector<8x384xf32>
    %184 = tpu.matmul %181, %183, %cst_79 {dimension_numbers = #tpu.dot_dimension_numbers<[1], [0], [0], [1], [0, 0, 1, 1], [], []>} : vector<8x128xbf16>, vector<128x384xbf16>, vector<8x384xf32> -> vector<8x384xf32>
    %c1_80 = arith.constant 1 : index
    %c0_81 = arith.constant 0 : index
    %c0_82 = arith.constant 0 : index
    %185 = vector.load %arg6[%c1_80, %c0_81, %c0_82] : memref<2x1x384xf32, #tpu.memory_space<vmem>>, vector<1x1x384xf32>
    %186 = vector.shape_cast %185 : vector<1x1x384xf32> to vector<1x384xf32>
    %187 = vector.broadcast %186 : vector<1x384xf32> to vector<8x384xf32>
    %188 = arith.addf %184, %187 : vector<8x384xf32>
    %189 = vector.extract_strided_slice %188 {offsets = [0, 0], sizes = [8, 128], strides = [1, 1]} : vector<8x384xf32> to vector<8x128xf32>
    %190 = vector.shape_cast %189 : vector<8x128xf32> to vector<1x8x128xf32>
    %191 = vector.extract_strided_slice %188 {offsets = [0, 128], sizes = [8, 128], strides = [1, 1]} : vector<8x384xf32> to vector<8x128xf32>
    %192 = vector.shape_cast %191 : vector<8x128xf32> to vector<1x8x128xf32>
    %193 = vector.extract_strided_slice %188 {offsets = [0, 256], sizes = [8, 128], strides = [1, 1]} : vector<8x384xf32> to vector<8x128xf32>
    %194 = vector.shape_cast %193 : vector<8x128xf32> to vector<1x8x128xf32>
    %c1_83 = arith.constant 1 : index
    %c0_84 = arith.constant 0 : index
    %c0_85 = arith.constant 0 : index
    %195 = vector.load %arg7[%c1_83, %c0_84, %c0_85] : memref<2x128x128xbf16, #tpu.memory_space<vmem>>, vector<1x128x128xbf16>
    %196 = vector.shape_cast %195 : vector<1x128x128xbf16> to vector<128x128xbf16>
    %197 = vector.extract_strided_slice %190 {offsets = [0, 0, 0], sizes = [1, 8, 64], strides = [1, 1, 1]} : vector<1x8x128xf32> to vector<1x8x64xf32>
    %198 = arith.truncf %197 : vector<1x8x64xf32> to vector<1x8x64xbf16>
    %199 = vector.extract_strided_slice %192 {offsets = [0, 0, 0], sizes = [1, 8, 64], strides = [1, 1, 1]} : vector<1x8x128xf32> to vector<1x8x64xf32>
    %200 = arith.truncf %199 : vector<1x8x64xf32> to vector<1x8x64xbf16>
    %201 = vector.extract_strided_slice %194 {offsets = [0, 0, 0], sizes = [1, 8, 64], strides = [1, 1, 1]} : vector<1x8x128xf32> to vector<1x8x64xf32>
    %202 = arith.truncf %201 : vector<1x8x64xf32> to vector<1x8x64xbf16>
    "tpu.trace_start"() <{level = 10 : i32, message = "bqd,bkd->bqk"}> : () -> ()
    %cst_86 = arith.constant dense<0.000000e+00> : vector<1x8x8xf32>
    %203 = tpu.matmul %198, %200, %cst_86 {dimension_numbers = #tpu.dot_dimension_numbers<[2], [2], [1], [1], [0, 0, 0, 1, 1, 1], [0], [0]>} : vector<1x8x64xbf16>, vector<1x8x64xbf16>, vector<1x8x8xf32> -> vector<1x8x8xf32>
    "tpu.trace_stop"() : () -> ()
    %204 = vector.broadcast %31 : vector<1x1x8xf32> to vector<1x8x8xf32>
    %205 = arith.addf %203, %204 : vector<1x8x8xf32>
    %cst_87 = arith.constant dense<0xFF800000> : vector<1x8xf32>
    %206 = vector.multi_reduction <maximumf>, %205, %cst_87 [2] : vector<1x8x8xf32> to vector<1x8xf32>
    %207 = vector.shape_cast %206 : vector<1x8xf32> to vector<1x8x1xf32>
    %208 = vector.broadcast %207 : vector<1x8x1xf32> to vector<1x8x8xf32>
    %209 = arith.subf %205, %208 : vector<1x8x8xf32>
    %210 = math.exp %209 : vector<1x8x8xf32>
    %cst_88 = arith.constant dense<0.000000e+00> : vector<1x8xf32>
    %211 = vector.multi_reduction <add>, %210, %cst_88 [2] : vector<1x8x8xf32> to vector<1x8xf32>
    %212 = vector.shape_cast %211 : vector<1x8xf32> to vector<1x8x1xf32>
    %213 = tpu.reciprocal %212 {approx = true} : vector<1x8x1xf32> -> vector<1x8x1xf32>
    %214 = vector.broadcast %213 : vector<1x8x1xf32> to vector<1x8x8xf32>
    %215 = arith.mulf %210, %214 : vector<1x8x8xf32>
    %216 = arith.truncf %215 : vector<1x8x8xf32> to vector<1x8x8xbf16>
    "tpu.trace_start"() <{level = 10 : i32, message = "bqk,bkd->bqd"}> : () -> ()
    %cst_89 = arith.constant dense<0.000000e+00> : vector<1x8x64xf32>
    %217 = tpu.matmul %216, %202, %cst_89 {dimension_numbers = #tpu.dot_dimension_numbers<[2], [1], [1], [2], [0, 0, 0, 1, 1, 2], [0], [0]>} : vector<1x8x8xbf16>, vector<1x8x64xbf16>, vector<1x8x64xf32> -> vector<1x8x64xf32>
    "tpu.trace_stop"() : () -> ()
    %218 = vector.shape_cast %217 : vector<1x8x64xf32> to vector<8x64xf32>
    %219 = arith.truncf %218 : vector<8x64xf32> to vector<8x64xbf16>
    %220 = vector.extract_strided_slice %196 {offsets = [0, 0], sizes = [64, 128], strides = [1, 1]} : vector<128x128xbf16> to vector<64x128xbf16>
    %cst_90 = arith.constant dense<0.000000e+00> : vector<8x128xf32>
    %221 = tpu.matmul %219, %220, %cst_90 {dimension_numbers = #tpu.dot_dimension_numbers<[1], [0], [0], [1], [0, 0, 1, 1], [], []>} : vector<8x64xbf16>, vector<64x128xbf16>, vector<8x128xf32> -> vector<8x128xf32>
    %222 = vector.extract_strided_slice %190 {offsets = [0, 0, 64], sizes = [1, 8, 64], strides = [1, 1, 1]} : vector<1x8x128xf32> to vector<1x8x64xf32>
    %223 = arith.truncf %222 : vector<1x8x64xf32> to vector<1x8x64xbf16>
    %224 = vector.extract_strided_slice %192 {offsets = [0, 0, 64], sizes = [1, 8, 64], strides = [1, 1, 1]} : vector<1x8x128xf32> to vector<1x8x64xf32>
    %225 = arith.truncf %224 : vector<1x8x64xf32> to vector<1x8x64xbf16>
    %226 = vector.extract_strided_slice %194 {offsets = [0, 0, 64], sizes = [1, 8, 64], strides = [1, 1, 1]} : vector<1x8x128xf32> to vector<1x8x64xf32>
    %227 = arith.truncf %226 : vector<1x8x64xf32> to vector<1x8x64xbf16>
    "tpu.trace_start"() <{level = 10 : i32, message = "bqd,bkd->bqk"}> : () -> ()
    %cst_91 = arith.constant dense<0.000000e+00> : vector<1x8x8xf32>
    %228 = tpu.matmul %223, %225, %cst_91 {dimension_numbers = #tpu.dot_dimension_numbers<[2], [2], [1], [1], [0, 0, 0, 1, 1, 1], [0], [0]>} : vector<1x8x64xbf16>, vector<1x8x64xbf16>, vector<1x8x8xf32> -> vector<1x8x8xf32>
    "tpu.trace_stop"() : () -> ()
    %229 = vector.broadcast %31 : vector<1x1x8xf32> to vector<1x8x8xf32>
    %230 = arith.addf %228, %229 : vector<1x8x8xf32>
    %cst_92 = arith.constant dense<0xFF800000> : vector<1x8xf32>
    %231 = vector.multi_reduction <maximumf>, %230, %cst_92 [2] : vector<1x8x8xf32> to vector<1x8xf32>
    %232 = vector.shape_cast %231 : vector<1x8xf32> to vector<1x8x1xf32>
    %233 = vector.broadcast %232 : vector<1x8x1xf32> to vector<1x8x8xf32>
    %234 = arith.subf %230, %233 : vector<1x8x8xf32>
    %235 = math.exp %234 : vector<1x8x8xf32>
    %cst_93 = arith.constant dense<0.000000e+00> : vector<1x8xf32>
    %236 = vector.multi_reduction <add>, %235, %cst_93 [2] : vector<1x8x8xf32> to vector<1x8xf32>
    %237 = vector.shape_cast %236 : vector<1x8xf32> to vector<1x8x1xf32>
    %238 = tpu.reciprocal %237 {approx = true} : vector<1x8x1xf32> -> vector<1x8x1xf32>
    %239 = vector.broadcast %238 : vector<1x8x1xf32> to vector<1x8x8xf32>
    %240 = arith.mulf %235, %239 : vector<1x8x8xf32>
    %241 = arith.truncf %240 : vector<1x8x8xf32> to vector<1x8x8xbf16>
    "tpu.trace_start"() <{level = 10 : i32, message = "bqk,bkd->bqd"}> : () -> ()
    %cst_94 = arith.constant dense<0.000000e+00> : vector<1x8x64xf32>
    %242 = tpu.matmul %241, %227, %cst_94 {dimension_numbers = #tpu.dot_dimension_numbers<[2], [1], [1], [2], [0, 0, 0, 1, 1, 2], [0], [0]>} : vector<1x8x8xbf16>, vector<1x8x64xbf16>, vector<1x8x64xf32> -> vector<1x8x64xf32>
    "tpu.trace_stop"() : () -> ()
    %243 = vector.shape_cast %242 : vector<1x8x64xf32> to vector<8x64xf32>
    %244 = arith.truncf %243 : vector<8x64xf32> to vector<8x64xbf16>
    %245 = vector.extract_strided_slice %196 {offsets = [64, 0], sizes = [64, 128], strides = [1, 1]} : vector<128x128xbf16> to vector<64x128xbf16>
    %cst_95 = arith.constant dense<0.000000e+00> : vector<8x128xf32>
    %246 = tpu.matmul %244, %245, %cst_95 {dimension_numbers = #tpu.dot_dimension_numbers<[1], [0], [0], [1], [0, 0, 1, 1], [], []>} : vector<8x64xbf16>, vector<64x128xbf16>, vector<8x128xf32> -> vector<8x128xf32>
    %247 = arith.addf %221, %246 : vector<8x128xf32>
    %c1_96 = arith.constant 1 : index
    %c0_97 = arith.constant 0 : index
    %c0_98 = arith.constant 0 : index
    %248 = vector.load %arg8[%c1_96, %c0_97, %c0_98] : memref<2x1x128xf32, #tpu.memory_space<vmem>>, vector<1x1x128xf32>
    %249 = vector.shape_cast %248 : vector<1x1x128xf32> to vector<1x128xf32>
    %250 = vector.broadcast %249 : vector<1x128xf32> to vector<8x128xf32>
    %251 = arith.addf %247, %250 : vector<8x128xf32>
    %252 = arith.addf %180, %251 : vector<8x128xf32>
    %c1_99 = arith.constant 1 : index
    %c0_100 = arith.constant 0 : index
    %c0_101 = arith.constant 0 : index
    %253 = vector.load %arg9[%c1_99, %c0_100, %c0_101] : memref<2x1x128xf32, #tpu.memory_space<vmem>>, vector<1x1x128xf32>
    %254 = vector.shape_cast %253 : vector<1x1x128xf32> to vector<1x128xf32>
    %c1_102 = arith.constant 1 : index
    %c0_103 = arith.constant 0 : index
    %c0_104 = arith.constant 0 : index
    %255 = vector.load %arg10[%c1_102, %c0_103, %c0_104] : memref<2x1x128xf32, #tpu.memory_space<vmem>>, vector<1x1x128xf32>
    %256 = vector.shape_cast %255 : vector<1x1x128xf32> to vector<1x128xf32>
    %cst_105 = arith.constant dense<0.000000e+00> : vector<8xf32>
    %257 = vector.multi_reduction <add>, %252, %cst_105 [1] : vector<8x128xf32> to vector<8xf32>
    %258 = vector.shape_cast %257 : vector<8xf32> to vector<8x1xf32>
    %cst_106 = arith.constant 1.280000e+02 : f32
    %259 = vector.broadcast %cst_106 : f32 to vector<8x1xf32>
    %260 = arith.divf %258, %259 : vector<8x1xf32>
    %261 = vector.broadcast %260 : vector<8x1xf32> to vector<8x128xf32>
    %262 = arith.subf %252, %261 : vector<8x128xf32>
    %263 = arith.mulf %262, %262 : vector<8x128xf32>
    %cst_107 = arith.constant dense<0.000000e+00> : vector<8xf32>
    %264 = vector.multi_reduction <add>, %263, %cst_107 [1] : vector<8x128xf32> to vector<8xf32>
    %265 = vector.shape_cast %264 : vector<8xf32> to vector<8x1xf32>
    %cst_108 = arith.constant 1.280000e+02 : f32
    %266 = vector.broadcast %cst_108 : f32 to vector<8x1xf32>
    %267 = arith.divf %265, %266 : vector<8x1xf32>
    %268 = vector.broadcast %260 : vector<8x1xf32> to vector<8x128xf32>
    %269 = arith.subf %252, %268 : vector<8x128xf32>
    %cst_109 = arith.constant 9.99999996E-13 : f32
    %270 = vector.broadcast %cst_109 : f32 to vector<8x1xf32>
    %271 = arith.addf %267, %270 : vector<8x1xf32>
    %272 = math.rsqrt %271 : vector<8x1xf32>
    %273 = vector.broadcast %272 : vector<8x1xf32> to vector<8x128xf32>
    %274 = arith.mulf %269, %273 : vector<8x128xf32>
    %275 = vector.broadcast %254 : vector<1x128xf32> to vector<8x128xf32>
    %276 = arith.mulf %274, %275 : vector<8x128xf32>
    %277 = vector.broadcast %256 : vector<1x128xf32> to vector<8x128xf32>
    %278 = arith.addf %276, %277 : vector<8x128xf32>
    %279 = arith.truncf %278 : vector<8x128xf32> to vector<8x128xbf16>
    %c1_110 = arith.constant 1 : index
    %c0_111 = arith.constant 0 : index
    %c0_112 = arith.constant 0 : index
    %280 = vector.load %arg11[%c1_110, %c0_111, %c0_112] : memref<2x128x512xbf16, #tpu.memory_space<vmem>>, vector<1x128x512xbf16>
    %281 = vector.shape_cast %280 : vector<1x128x512xbf16> to vector<128x512xbf16>
    %cst_113 = arith.constant dense<0.000000e+00> : vector<8x512xf32>
    %282 = tpu.matmul %279, %281, %cst_113 {dimension_numbers = #tpu.dot_dimension_numbers<[1], [0], [0], [1], [0, 0, 1, 1], [], []>} : vector<8x128xbf16>, vector<128x512xbf16>, vector<8x512xf32> -> vector<8x512xf32>
    %c1_114 = arith.constant 1 : index
    %c0_115 = arith.constant 0 : index
    %c0_116 = arith.constant 0 : index
    %283 = vector.load %arg12[%c1_114, %c0_115, %c0_116] : memref<2x1x512xf32, #tpu.memory_space<vmem>>, vector<1x1x512xf32>
    %284 = vector.shape_cast %283 : vector<1x1x512xf32> to vector<1x512xf32>
    %285 = vector.broadcast %284 : vector<1x512xf32> to vector<8x512xf32>
    %286 = arith.addf %282, %285 : vector<8x512xf32>
    %cst_117 = arith.constant 5.000000e-01 : f32
    %287 = vector.broadcast %cst_117 : f32 to vector<8x512xf32>
    %288 = arith.mulf %287, %286 : vector<8x512xf32>
    %cst_118 = arith.constant 0.707106769 : f32
    %289 = vector.broadcast %cst_118 : f32 to vector<8x512xf32>
    %290 = arith.mulf %286, %289 : vector<8x512xf32>
    %291 = math.erf %290 : vector<8x512xf32>
    %cst_119 = arith.constant 1.000000e+00 : f32
    %292 = vector.broadcast %cst_119 : f32 to vector<8x512xf32>
    %293 = arith.addf %292, %291 : vector<8x512xf32>
    %294 = arith.mulf %288, %293 : vector<8x512xf32>
    %295 = arith.truncf %294 : vector<8x512xf32> to vector<8x512xbf16>
    %c1_120 = arith.constant 1 : index
    %c0_121 = arith.constant 0 : index
    %c0_122 = arith.constant 0 : index
    %296 = vector.load %arg13[%c1_120, %c0_121, %c0_122] : memref<2x512x128xbf16, #tpu.memory_space<vmem>>, vector<1x512x128xbf16>
    %297 = vector.shape_cast %296 : vector<1x512x128xbf16> to vector<512x128xbf16>
    %cst_123 = arith.constant dense<0.000000e+00> : vector<8x128xf32>
    %298 = tpu.matmul %295, %297, %cst_123 {dimension_numbers = #tpu.dot_dimension_numbers<[1], [0], [0], [1], [0, 0, 1, 1], [], []>} : vector<8x512xbf16>, vector<512x128xbf16>, vector<8x128xf32> -> vector<8x128xf32>
    %c1_124 = arith.constant 1 : index
    %c0_125 = arith.constant 0 : index
    %c0_126 = arith.constant 0 : index
    %299 = vector.load %arg14[%c1_124, %c0_125, %c0_126] : memref<2x1x128xf32, #tpu.memory_space<vmem>>, vector<1x1x128xf32>
    %300 = vector.shape_cast %299 : vector<1x1x128xf32> to vector<1x128xf32>
    %301 = vector.broadcast %300 : vector<1x128xf32> to vector<8x128xf32>
    %302 = arith.addf %298, %301 : vector<8x128xf32>
    %303 = arith.addf %278, %302 : vector<8x128xf32>
    %c1_127 = arith.constant 1 : index
    %c0_128 = arith.constant 0 : index
    %c0_129 = arith.constant 0 : index
    %304 = vector.load %arg15[%c1_127, %c0_128, %c0_129] : memref<2x1x128xf32, #tpu.memory_space<vmem>>, vector<1x1x128xf32>
    %305 = vector.shape_cast %304 : vector<1x1x128xf32> to vector<1x128xf32>
    %c1_130 = arith.constant 1 : index
    %c0_131 = arith.constant 0 : index
    %c0_132 = arith.constant 0 : index
    %306 = vector.load %arg16[%c1_130, %c0_131, %c0_132] : memref<2x1x128xf32, #tpu.memory_space<vmem>>, vector<1x1x128xf32>
    %307 = vector.shape_cast %306 : vector<1x1x128xf32> to vector<1x128xf32>
    %cst_133 = arith.constant dense<0.000000e+00> : vector<8xf32>
    %308 = vector.multi_reduction <add>, %303, %cst_133 [1] : vector<8x128xf32> to vector<8xf32>
    %309 = vector.shape_cast %308 : vector<8xf32> to vector<8x1xf32>
    %cst_134 = arith.constant 1.280000e+02 : f32
    %310 = vector.broadcast %cst_134 : f32 to vector<8x1xf32>
    %311 = arith.divf %309, %310 : vector<8x1xf32>
    %312 = vector.broadcast %311 : vector<8x1xf32> to vector<8x128xf32>
    %313 = arith.subf %303, %312 : vector<8x128xf32>
    %314 = arith.mulf %313, %313 : vector<8x128xf32>
    %cst_135 = arith.constant dense<0.000000e+00> : vector<8xf32>
    %315 = vector.multi_reduction <add>, %314, %cst_135 [1] : vector<8x128xf32> to vector<8xf32>
    %316 = vector.shape_cast %315 : vector<8xf32> to vector<8x1xf32>
    %cst_136 = arith.constant 1.280000e+02 : f32
    %317 = vector.broadcast %cst_136 : f32 to vector<8x1xf32>
    %318 = arith.divf %316, %317 : vector<8x1xf32>
    %319 = vector.broadcast %311 : vector<8x1xf32> to vector<8x128xf32>
    %320 = arith.subf %303, %319 : vector<8x128xf32>
    %cst_137 = arith.constant 9.99999996E-13 : f32
    %321 = vector.broadcast %cst_137 : f32 to vector<8x1xf32>
    %322 = arith.addf %318, %321 : vector<8x1xf32>
    %323 = math.rsqrt %322 : vector<8x1xf32>
    %324 = vector.broadcast %323 : vector<8x1xf32> to vector<8x128xf32>
    %325 = arith.mulf %320, %324 : vector<8x128xf32>
    %326 = vector.broadcast %305 : vector<1x128xf32> to vector<8x128xf32>
    %327 = arith.mulf %325, %326 : vector<8x128xf32>
    %328 = vector.broadcast %307 : vector<1x128xf32> to vector<8x128xf32>
    %329 = arith.addf %327, %328 : vector<8x128xf32>
    %330 = vector.shape_cast %329 : vector<8x128xf32> to vector<1x8x128xf32>
    %331 = vector.extract_strided_slice %330 {offsets = [0, 0, 0], sizes = [1, 1, 128], strides = [1, 1, 1]} : vector<1x8x128xf32> to vector<1x1x128xf32>
    %332 = vector.shape_cast %331 : vector<1x1x128xf32> to vector<1x128xf32>
    %333 = arith.truncf %332 : vector<1x128xf32> to vector<1x128xbf16>
    %c0_138 = arith.constant 0 : index
    %c0_139 = arith.constant 0 : index
    %334 = vector.load %arg17[%c0_138, %c0_139] : memref<128x128xbf16, #tpu.memory_space<vmem>>, vector<128x128xbf16>
    %cst_140 = arith.constant dense<0.000000e+00> : vector<1x128xf32>
    %335 = tpu.matmul %333, %334, %cst_140 {dimension_numbers = #tpu.dot_dimension_numbers<[1], [0], [0], [1], [0, 0, 1, 1], [], []>} : vector<1x128xbf16>, vector<128x128xbf16>, vector<1x128xf32> -> vector<1x128xf32>
    %c0_141 = arith.constant 0 : index
    %c0_142 = arith.constant 0 : index
    %336 = vector.load %arg18[%c0_141, %c0_142] : memref<1x128xf32, #tpu.memory_space<vmem>>, vector<1x128xf32>
    %337 = arith.addf %335, %336 : vector<1x128xf32>
    %338 = math.tanh %337 : vector<1x128xf32>
    %339 = arith.truncf %338 : vector<1x128xf32> to vector<1x128xbf16>
    %c0_143 = arith.constant 0 : index
    %c0_144 = arith.constant 0 : index
    %340 = vector.load %arg19[%c0_143, %c0_144] : memref<128x128xbf16, #tpu.memory_space<vmem>>, vector<128x128xbf16>
    %cst_145 = arith.constant dense<0.000000e+00> : vector<1x128xf32>
    %341 = tpu.matmul %339, %340, %cst_145 {dimension_numbers = #tpu.dot_dimension_numbers<[1], [0], [0], [1], [0, 0, 1, 1], [], []>} : vector<1x128xbf16>, vector<128x128xbf16>, vector<1x128xf32> -> vector<1x128xf32>
    %c0_146 = arith.constant 0 : index
    %c0_147 = arith.constant 0 : index
    %342 = vector.load %arg20[%c0_146, %c0_147] : memref<1x128xf32, #tpu.memory_space<vmem>>, vector<1x128xf32>
    %343 = arith.addf %341, %342 : vector<1x128xf32>
    %c0_148 = arith.constant 0 : index
    %c0_149 = arith.constant 0 : index
    %c0_150 = arith.constant 0 : index
    %344 = vector.load %arg21[%c0_148, %c0_149, %c0_150] : memref<1x1x128xf32, #tpu.memory_space<vmem>>, vector<1x1x128xf32>
    %345 = vector.shape_cast %344 : vector<1x1x128xf32> to vector<1x128xf32>
    %346 = vector.shape_cast %343 : vector<1x128xf32> to vector<1x1x128xf32>
    tpu.vector_store %arg21[%c0_148, %c0_149, %c0_150], %346 {strides = array<i32>} : memref<1x1x128xf32, #tpu.memory_space<vmem>>, vector<1x1x128xf32>,
    return
  }
  func.func @transform_0(%arg0: i32) -> (i32, i32, i32) {
    %c0_i32 = arith.constant 0 : i32
    %c0_i32_0 = arith.constant 0 : i32
    %c0_i32_1 = arith.constant 0 : i32
    return %arg0, %c0_i32, %c0_i32_0 : i32, i32, i32
  }
  func.func @transform_1(%arg0: i32) -> (i32, i32, i32) {
    %c0_i32 = arith.constant 0 : i32
    %c0_i32_0 = arith.constant 0 : i32
    %c0_i32_1 = arith.constant 0 : i32
    return %arg0, %c0_i32, %c0_i32_0 : i32, i32, i32
  }
  func.func @transform_2(%arg0: i32) -> (i32, i32) {
    %c0_i32 = arith.constant 0 : i32
    %c0_i32_0 = arith.constant 0 : i32
    %c0_i32_1 = arith.constant 0 : i32
    return %c0_i32, %c0_i32_0 : i32, i32
  }
  func.func @transform_3(%arg0: i32) -> (i32, i32) {
    %c0_i32 = arith.constant 0 : i32
    %c0_i32_0 = arith.constant 0 : i32
    %c0_i32_1 = arith.constant 0 : i32
    return %c0_i32, %c0_i32_0 : i32, i32
  }
  func.func @transform_4(%arg0: i32) -> (i32, i32, i32) {
    %c0_i32 = arith.constant 0 : i32
    %c0_i32_0 = arith.constant 0 : i32
    %c0_i32_1 = arith.constant 0 : i32
    %c0_i32_2 = arith.constant 0 : i32
    return %c0_i32, %c0_i32_0, %c0_i32_1 : i32, i32, i32
  }
  func.func @transform_5(%arg0: i32) -> (i32, i32, i32) {
    %c0_i32 = arith.constant 0 : i32
    %c0_i32_0 = arith.constant 0 : i32
    %c0_i32_1 = arith.constant 0 : i32
    %c0_i32_2 = arith.constant 0 : i32
    return %c0_i32, %c0_i32_0, %c0_i32_1 : i32, i32, i32
  }
  func.func @transform_6(%arg0: i32) -> (i32, i32, i32) {
    %c0_i32 = arith.constant 0 : i32
    %c0_i32_0 = arith.constant 0 : i32
    %c0_i32_1 = arith.constant 0 : i32
    %c0_i32_2 = arith.constant 0 : i32
    return %c0_i32, %c0_i32_0, %c0_i32_1 : i32, i32, i32
  }
  func.func @transform_7(%arg0: i32) -> (i32, i32, i32) {
    %c0_i32 = arith.constant 0 : i32
    %c0_i32_0 = arith.constant 0 : i32
    %c0_i32_1 = arith.constant 0 : i32
    %c0_i32_2 = arith.constant 0 : i32
    return %c0_i32, %c0_i32_0, %c0_i32_1 : i32, i32, i32
  }
  func.func @transform_8(%arg0: i32) -> (i32, i32, i32) {
    %c0_i32 = arith.constant 0 : i32
    %c0_i32_0 = arith.constant 0 : i32
    %c0_i32_1 = arith.constant 0 : i32
    %c0_i32_2 = arith.constant 0 : i32
    return %c0_i32, %c0_i32_0, %c0_i32_1 : i32, i32, i32
  }
  func.func @transform_9(%arg0: i32) -> (i32, i32, i32) {
    %c0_i32 = arith.constant 0 : i32
    %c0_i32_0 = arith.constant 0 : i32
    %c0_i32_1 = arith.constant 0 : i32
    %c0_i32_2 = arith.constant 0 : i32
    return %c0_i32, %c0_i32_0, %c0_i32_1 : i32, i32, i32
  }
  func.func @transform_10(%arg0: i32) -> (i32, i32, i32) {
    %c0_i32 = arith.constant 0 : i32
    %c0_i32_0 = arith.constant 0 : i32
    %c0_i32_1 = arith.constant 0 : i32
    %c0_i32_2 = arith.constant 0 : i32
    return %c0_i32, %c0_i32_0, %c0_i32_1 : i32, i32, i32
  }
  func.func @transform_11(%arg0: i32) -> (i32, i32, i32) {
    %c0_i32 = arith.constant 0 : i32
    %c0_i32_0 = arith.constant 0 : i32
    %c0_i32_1 = arith.constant 0 : i32
    %c0_i32_2 = arith.constant 0 : i32
    return %c0_i32, %c0_i32_0, %c0_i32_1 : i32, i32, i32
  }
  func.func @transform_12(%arg0: i32) -> (i32, i32, i32) {
    %c0_i32 = arith.constant 0 : i32
    %c0_i32_0 = arith.constant 0 : i32
    %c0_i32_1 = arith.constant 0 : i32
    %c0_i32_2 = arith.constant 0 : i32
    return %c0_i32, %c0_i32_0, %c0_i32_1 : i32, i32, i32
  }
  func.func @transform_13(%arg0: i32) -> (i32, i32, i32) {
    %c0_i32 = arith.constant 0 : i32
    %c0_i32_0 = arith.constant 0 : i32
    %c0_i32_1 = arith.constant 0 : i32
    %c0_i32_2 = arith.constant 0 : i32
    return %c0_i32, %c0_i32_0, %c0_i32_1 : i32, i32, i32
  }
  func.func @transform_14(%arg0: i32) -> (i32, i32, i32) {
    %c0_i32 = arith.constant 0 : i32
    %c0_i32_0 = arith.constant 0 : i32
    %c0_i32_1 = arith.constant 0 : i32
    %c0_i32_2 = arith.constant 0 : i32
    return %c0_i32, %c0_i32_0, %c0_i32_1 : i32, i32, i32
  }
  func.func @transform_15(%arg0: i32) -> (i32, i32, i32) {
    %c0_i32 = arith.constant 0 : i32
    %c0_i32_0 = arith.constant 0 : i32
    %c0_i32_1 = arith.constant 0 : i32
    %c0_i32_2 = arith.constant 0 : i32
    return %c0_i32, %c0_i32_0, %c0_i32_1 : i32, i32, i32
  }
  func.func @transform_16(%arg0: i32) -> (i32, i32) {
    %c0_i32 = arith.constant 0 : i32
    %c0_i32_0 = arith.constant 0 : i32
    %c0_i32_1 = arith.constant 0 : i32
    return %c0_i32, %c0_i32_0 : i32, i32
  }
  func.func @transform_17(%arg0: i32) -> (i32, i32) {
    %c0_i32 = arith.constant 0 : i32
    %c0_i32_0 = arith.constant 0 : i32
    %c0_i32_1 = arith.constant 0 : i32
    return %c0_i32, %c0_i32_0 : i32, i32
  }
  func.func @transform_18(%arg0: i32) -> (i32, i32) {
    %c0_i32 = arith.constant 0 : i32
    %c0_i32_0 = arith.constant 0 : i32
    %c0_i32_1 = arith.constant 0 : i32
    return %c0_i32, %c0_i32_0 : i32, i32
  }
  func.func @transform_19(%arg0: i32) -> (i32, i32) {
    %c0_i32 = arith.constant 0 : i32
    %c0_i32_0 = arith.constant 0 : i32
    %c0_i32_1 = arith.constant 0 : i32
    return %c0_i32, %c0_i32_0 : i32, i32
  }
  func.func @transform_20(%arg0: i32) -> (i32, i32, i32) {
    %c0_i32 = arith.constant 0 : i32
    %c0_i32_0 = arith.constant 0 : i32
    %c0_i32_1 = arith.constant 0 : i32
    return %arg0, %c0_i32, %c0_i32_0 : i32, i32, i32
  }
}

</mosaic_0001>

<bundles_post_ra>
// kernel: model_forward.1
= control target key start
LH: loop header
LB: loop body
LE: loop exit
PB: predicated region body
PF: predicated region fallthrough
CT: control target
= control target key end

     0   :  { %s5576_s0 = inlined_call_operand.vmem [shape: bf16[2,8,128], index: 0, kind: input, shape index: {}]   ;;  %s5577_s1 = inlined_call_operand.vmem [shape: f32[2,1,8], index: 1, kind: input, shape index: {}]   ;;  %s5578_s2 = inlined_call_operand.vmem [shape: f32[1,128], index: 2, kind: input, shape index: {}]   ;;  %s5579_s3 = inlined_call_operand.vmem [shape: f32[1,128], index: 3, kind: input, shape index: {}]   ;;  %s5580_s4 = inlined_call_operand.hbm [shape: bf16[2,128,384], index: 4, kind: input, shape index: {}]   ;;  %s5581_s5 = inlined_call_operand.vmem [shape: f32[2,1,384], index: 5, kind: input, shape index: {}]   ;;  %s5582_s6 = inlined_call_operand.vmem [shape: bf16[2,128,128], index: 6, kind: input, shape index: {}]   ;;  %s5583_s7 = inlined_call_operand.vmem [shape: f32[2,1,128], index: 7, kind: input, shape index: {}]   ;;  %s5584_s8 = inlined_call_operand.vmem [shape: f32[2,1,128], index: 8, kind: input, shape index: {}]   ;;  %s5585_s9 = inlined_call_operand.vmem [shape: f32[2,1,128], index: 9, kind: input, shape index: {}]   ;;  %s5586_s10 = inlined_call_operand.hbm [shape: bf16[2,128,512], index: 10, kind: input, shape index: {}]   ;;  %s5587_s11 = inlined_call_operand.vmem [shape: f32[2,1,512], index: 11, kind: input, shape index: {}]   ;;  %s5588_s12 = inlined_call_operand.hbm [shape: bf16[2,512,128], index: 12, kind: input, shape index: {}]   ;;  %s5589_s13 = inlined_call_operand.vmem [shape: f32[2,1,128], index: 13, kind: input, shape index: {}]   ;;  %s5590_s14 = inlined_call_operand.vmem [shape: f32[2,1,128], index: 14, kind: input, shape index: {}]   ;;  %s5591_s15 = inlined_call_operand.vmem [shape: f32[2,1,128], index: 15, kind: input, shape index: {}]   ;;  %s5592_s16 = inlined_call_operand.vmem [shape: bf16[128,128], index: 16, kind: input, shape index: {}]   ;;  %s5593_s17 = inlined_call_operand.vmem [shape: f32[1,128], index: 17, kind: input, shape index: {}]   ;;  %s5594_s18 = inlined_call_operand.vmem [shape: bf16[128,128], index: 18, kind: input, shape index: {}]   ;;  %s5595_s19 = inlined_call_operand.vmem [shape: f32[1,128], index: 19, kind: input, shape index: {}]   ;;  %s5596_s20 = inlined_call_operand.hbm [shape: f32[2,1,128], index: 20, kind: output, shape index: {}]  }
   0x1   :  { %5611 = sst [smem:[#allocation20_spill]] %s5576_s0 }
   0x2   :  { %5612 = sst [smem:[#allocation21_spill]] %s5577_s1 }
   0x3   :  { %5613 = sst [smem:[#allocation22_spill]] %s5578_s2 }
   0x4   :  { %5614 = sst [smem:[#allocation23_spill]] %s5579_s3 }
   0x5   :  { %5615 = sst [smem:[#allocation24_spill]] %s5580_s4 }
   0x6   :  { %5616 = sst [smem:[#allocation25_spill]] %s5586_s10 }
   0x7   :  { %5617 = sst [smem:[#allocation26_spill]] %s5593_s17 }
   0x8   :  { %5618 = sst [smem:[#allocation27_spill]] %s5595_s19 }
   0x9   :  { %5619 = sst [smem:[#allocation28_spill]] %s5596_s20 }
   0xa   :  { %25 = vsyncpa [#allocation3], 0 }
   0xb   :  { %26 = vsyncpa [#allocation6], 0 }
   0xc   :  { %27 = vsyncpa [#allocation4], 0 }
   0xd   :  { %29 = vsyncpa [#allocation4 + $0x1], 0  ;;  %s5040_s1 = smov 0   ;;  %s5042_s22 = smov 0  }
   0xe   :  { %s5044_s23 = smov 0   ;;  %s5046_s24 = smov 0  }
   0xf LB: > { %5620 = sst [smem:[#allocation12_spill]] %s4907_s1  ;;  %s5061_s2 = sadd.s32 4294967295, %s4919_s24   ;;  %s4919_s24 = sphi %s5046_s24, %s5654_s24   ;;  %s4915_s23 = sphi %s5044_s23, %s5657_s23   ;;  %s4911_s22 = sphi %s5042_s22, %s5656_s22   ;;  %s4907_s1 = sphi %s5040_s1, %s5655_s1  }
  0x10   : > { %5621 = sst [smem:[#allocation13_spill]] %s4911_s22  ;;  %s3777_s25 = sadd.s32 4294967294, %s4919_s24  }
  0x11   : > { %5622 = sst [smem:[#allocation14_spill]] %s4915_s23  ;;  %s5065_s3 = sadd.s32 1, %s4919_s24  }
  0x12   : > { %5623 = sst [smem:[#allocation15_spill]] %s4919_s24  ;;  %s472_s26 = sadd.s32 1, %s4915_s23 }
  0x13   : > { %5624 = sst [smem:[#allocation16_spill]] %s5065_s3  ;;  %s469_s27 = ssub.s32 %s4919_s24, %s5065_s3 }
  0x14   : > { %p482_p0 = scmp.ne.s32.totalorder %s4915_s23, %s4911_s22  ;;  %p470_p1 = scmp.eq.s32.totalorder %s469_s27, 0 }
  0x15   : > { %p483_p2 = scmp.eq.s32.totalorder %s5061_s2, 1  ;;  %p488_p3 = scmp.ne.s32.totalorder %s4911_s22, %s4907_s1 }
  0x16   : > { %p489_p4 = scmp.eq.s32.totalorder %s3777_s25, 1  ;;  %p3778_p7 = scmp.ge.s32.totalorder %s4919_s24, 1 }
  0x17   : > { %s5076_s28 = scalar_select %p470_p1, %s4915_s23, %s472_s26  }
  0x18   : > { %p5078_p5 = por %p483_p2, %p482_p0  ;;  %p5082_p6 = por %p489_p4, %p488_p3 }
  0x19   : > { %5625 = sst [smem:[#allocation17_spill]] %s5076_s28  ;;  %p496_p8 = scmp.lt.s32.totalorder %s4919_s24, 3 }
  0x1a   : > { %s5626_s4 = scalar_select %p5078_p5, 1, 0 }
  0x1b   : > { %s5628_s29 = scalar_select %p5082_p6, 1, 0 }
  0x1c   : > { %5627 = sst [smem:[#allocation18_spill]] %s5626_s4  ;;  %p5604_p9 = scmp.eq.s32.totalorder %s5061_s2, 0 }
  0x1d   : > { %5629 = sst [smem:[#allocation19_spill]] %s5628_s29  ;;  %p5089_p10 = pnand %p3778_p7, %p496_p8 }
  0x1e   : > { %s4921_s0 = smov [#allocation5]   ;;  %s4922_s26 = smov [#allocation2]  }
  0x1f   : > { %s5630_s30 = scalar_select %p5089_p10, 1, 0 }
  0x20   : > { %s542_s21 = sshll.u32 %s4921_s0, 4  ;;  %p4399_p11 = pneg %p5089_p10  ;;  %s543_s21 = int_to_ptr.vmem [resolvable:$true] %s542_s21 }
  0x21   : > { %s514_s27 = sshll.u32 %s4922_s26, 4  ;;  %s5632_s10 = sld [smem:[#allocation25_spill]]  ;;  %s5101_s27 = int_to_ptr.vmem [resolvable:$true] %s514_s27 }
  0x22   : > { %p5097_p12 = pnand %p5604_p9, %p4399_p11 }
  0x24   : > { %p5111_p0 = pneg %p5097_p12 }
  0x27   : > { %s4765_s3 = scalar_lea.hbm %s5632_s10, 8192 }
  0x28   : > { %p4766_p13 = scmp.ne.s32.totalorder %s5632_s10, %s4765_s3  ;;  %p4772_p3 = scmp.lt.u32.totalorder %s4765_s3, %s5632_s10 }
  0x2a   : > { %p4768_p1 = pnand %p5111_p0, %p4766_p13 }
  0x2c   : > { %p4769_p2 = pneg %p4768_p1 }
  0x2e   : > { %p4774_p4 = pnand %p4772_p3, %p4769_p2 }
  0x30   : > { %4777 = shalt.err (!%p4774_p4)
}
  0x31   : > { %s4778_s23 = scalar_lea.vmem %s543_s21, 8192  ;;  %p4786_p9 = scmp.lt.s32.totalorder %s543_s21, %s543_s21 }
  0x32   : > { %p4779_p7 = scmp.ne.s32.totalorder %s543_s21, %s4778_s23  ;;  %p4787_p6 = scmp.lt.s32.totalorder %s4778_s23, %s4778_s23 }
  0x34   : > { %p4781_p8 = pnand %p4779_p7, %p5111_p0  ;;  %p4788_p5 = por %p4787_p6, %p4786_p9 }
  0x36   : > { %p4782_p11 = pneg %p4781_p8 }
  0x38   : > { %p4789_p10 = pnand %p4788_p5, %p4782_p11 }
  0x3a   : > { %4792 = shalt.err (!%p4789_p10)
}
  0x3b   : > { %s4923_s1 = smov 256   ;;  %s4924_s28 = smov 16  }
  0x3c   : > { %4405 = dma.hbm_to_vmem [thread:$0]  (!%p5097_p12), %s5632_s10, 8192, %s543_s21, [#allocation6], %s4923_s1, %s4923_s1, %s4924_s28  }
  0x3d   : > { %s5634_s20 = sld [smem:[#allocation24_spill]] }
  0x43   : > { %s4793_s4 = scalar_lea.hbm %s5634_s20, 6144 }
  0x44   : > { %p4794_p13 = scmp.ne.s32.totalorder %s5634_s20, %s4793_s4  ;;  %p4800_p9 = scmp.lt.u32.totalorder %s4793_s4, %s5634_s20 }
  0x46   : > { %p4796_p5 = pnand %p4794_p13, %p5111_p0 }
  0x48   : > { %p4797_p6 = pneg %p4796_p5 }
  0x4a   : > { %p4802_p10 = pnand %p4800_p9, %p4797_p6 }
  0x4c   : > { %4805 = shalt.err (!%p4802_p10)
}
  0x4d   : > { %s4806_s21 = scalar_lea.vmem %s5101_s27, 6144  ;;  %p4814_p4 = scmp.lt.s32.totalorder %s5101_s27, %s5101_s27 }
  0x4e   : > { %p4807_p1 = scmp.ne.s32.totalorder %s5101_s27, %s4806_s21  ;;  %p4815_p7 = scmp.lt.s32.totalorder %s4806_s21, %s4806_s21 }
  0x50   : > { %p4809_p2 = pnand %p4807_p1, %p5111_p0  ;;  %p4816_p8 = por %p4815_p7, %p4814_p4 }
  0x52   : > { %p4810_p3 = pneg %p4809_p2 }
  0x54   : > { %p4817_p11 = pnand %p4816_p8, %p4810_p3 }
  0x56   : > { %4820 = shalt.err (!%p4817_p11)
}
  0x57   : > { %s4925_s17 = smov 192   ;;  %s4926_s19 = smov 12  }
  0x58   : > { %4402 = dma.hbm_to_vmem [thread:$0]  (!%p5097_p12), %s5634_s20, 6144, %s5101_s27, [#allocation3], %s4925_s17, %s4925_s17, %s4926_s19  }
  0x59   : > { %s4927_s1 = smov [#allocation7]   ;;  %s4821_s29 = scalar_lea.hbm %s5588_s12, 8192 }
  0x5a   : > { %s558_s28 = sshll.u32 %s4927_s1, 4  ;;  %p4822_p13 = scmp.ne.s32.totalorder %s5588_s12, %s4821_s29  ;;  %s559_s28 = int_to_ptr.vmem [resolvable:$true] %s558_s28 }
  0x5b   : > { %p4828_p9 = scmp.lt.u32.totalorder %s4821_s29, %s5588_s12 }
  0x5c   : > { %p4824_p5 = pnand %p4822_p13, %p5111_p0 }
  0x5e   : > { %p4825_p6 = pneg %p4824_p5 }
  0x60   : > { %p4830_p10 = pnand %p4828_p9, %p4825_p6 }
  0x62   : > { %4833 = shalt.err (!%p4830_p10)
}
  0x63   : > { %s4834_s27 = scalar_lea.vmem %s559_s28, 8192  ;;  %p4842_p4 = scmp.lt.s32.totalorder %s559_s28, %s559_s28 }
  0x64   : > { %p4835_p1 = scmp.ne.s32.totalorder %s559_s28, %s4834_s27  ;;  %p4843_p7 = scmp.lt.s32.totalorder %s4834_s27, %s4834_s27 }
  0x66   : > { %p4837_p2 = pnand %p4835_p1, %p5111_p0  ;;  %p4844_p8 = por %p4843_p7, %p4842_p4 }
  0x68   : > { %p4838_p3 = pneg %p4837_p2 }
  0x6a   : > { %p4845_p11 = pnand %p4844_p8, %p4838_p3 }
  0x6c   : > { %4848 = shalt.err (!%p4845_p11)
}
  0x6d   : > { %s4928_s17 = smov 64   ;;  %s4929_s19 = smov 4  }
  0x6e   : > { %4408 = dma.hbm_to_vmem [thread:$0]  (!%p5097_p12), %s5588_s12, 8192, %s559_s28, [#allocation6], %s4928_s17, %s4928_s17, %s4929_s19  }
  0x6f   : > { %p5635_p13 = scmp.ne.s32.totalorder %s5630_s30, 0 }
  0x70   : > { %p5636_p5 = scmp.eq.s32.totalorder (!%p5635_p13), %s5061_s2, 0 }
  0x71   : > { %608 = sbr.rel (%p5635_p13) target bundleno = 5673 (0x1629), region = 100 }
  0x78   : > { %4894 = dma.done.wait (%p5636_p5), [#allocation3], 6144   ;;  %p5637_p0 = pmov %p5636_p5 }
  0x7a   : > { %4896 = vsyncadd (%p5637_p0), [#allocation3], 4294961152  ;;  %p5638_p6 = pmov %p5637_p0 }
  0x7b   : > { %p5639_p9 = pmov %p5637_p0 }
  0x7c   : > { %4898 = dma.done.wait (%p5638_p6), [#allocation6], 16384  }
  0x7d   : > { %4900 = vsyncadd (%p5639_p9), [#allocation6], 4294950912  ;;  %p675_p10 = scmp.lt.s32.totalorder %s5061_s2, 1  ;;  %s5640_s1 = sld [smem:[#allocation20_spill]]  ;;  %v4465_v2 = vld [vmem:[#allocation2 + $0x4] ss:$12 sps:$4 sm:$0xff]   ;;  %v751_v42 = vlaneseq }
  0x7e   : > { %v4467_v3 = vld [vmem:[#allocation2] ss:$12 sps:$4 sm:$0xff]   ;;  %v4930_v4 = vmov 0.0   ;;  %v4468_v5 = vld [vmem:[#allocation2 + $0x8] ss:$12 sps:$4 sm:$0xff]   ;;  %894 = vmatprep.subr.bf16.mxu0 %v4465_v2  ;;  %v4931_v26 = vmov 0  }
  0x7f   : > { %s5180_s25 = scalar_select %p675_p10, %s5061_s2, 1  ;;  %4209 = vmatprep.subr.bf16.mxu1 %v4930_v4  ;;  %v4469_v6 = vld [vmem:[#allocation2 + $0x1c] ss:$12 sps:$4 sm:$0xff]   ;;  %v4471_v7 = vld [vmem:[#allocation2 + $0x18] ss:$12 sps:$4 sm:$0xff]   ;;  %895 = vmatpush1.bf16.msra.mxu0 %v4467_v3  ;;  %vm4932_vm0 = vmmov 0  }
  0x80   : > { %v4472_v8 = vld [vmem:[#allocation2 + $0x20] ss:$12 sps:$4 sm:$0xff]   ;;  %4210 = vmatpush3.bf16.msra.mxu1 %v4468_v5  ;;  %896 = vmatprep.subr.bf16.mxu0 %v4469_v6  ;;  %v4475_v14 = vld [vmem:[#allocation2 + $0x30] ss:$12 sps:$4 sm:$0xff]   ;;  %v4476_v15 = vld [vmem:[#allocation2 + $0x38] ss:$12 sps:$4 sm:$0xff]  }
  0x81   : > { %s3787_s30 = sshll.u32 %s5180_s25, 2  ;;  %v4473_v9 = vld [vmem:[#allocation2 + $0x34] ss:$12 sps:$4 sm:$0xff]   ;;  %4211 = vmatprep.subr.bf16.mxu1 %v4930_v4  ;;  %v4477_v16 = vld [vmem:[#allocation2 + $0x4c] ss:$12 sps:$4 sm:$0xff]   ;;  %926 = vmatprep.mubr.bf16.mxu0 %v4931_v26  ;;  %s5641_s29 = sld [smem:[#allocation22_spill]] }
  0x82   : > { %v4479_v17 = vld [vmem:[#allocation2 + $0x48] ss:$12 sps:$4 sm:$0xff]   ;;  %v4480_v18 = vld [vmem:[#allocation2 + $0x50] ss:$12 sps:$4 sm:$0xff]   ;;  %v4483_v20 = vld [vmem:[#allocation2 + $0x60] ss:$12 sps:$4 sm:$0xff]   ;;  %4225 = vmatprep.mubr.msk.bf16.mxu1 %vm4932_vm0, %v4930_v4 }
  0x83   : > { %s678_s28 = scalar_lea.vmem %s5640_s1, %s3787_s30  ;;  %897 = vmatpush1.bf16.msra.mxu0 %v4471_v7  ;;  %v4481_v19 = vld [vmem:[#allocation2 + $0x64] ss:$12 sps:$4 sm:$0xff]   ;;  %v4484_v21 = vld [vmem:[#allocation2 + $0x68] ss:$12 sps:$4 sm:$0xff]   ;;  %v4488_v24 = vld [vmem:[#allocation2 + $0x80] ss:$12 sps:$4 sm:$0xff]  }
  0x84   : > { %v683_v0 = vld [vmem:[%s678_s28] sm:$0xf]  ;;  %4212 = vmatpush3.bf16.msra.mxu1 %v4472_v8  ;;  %898 = vmatprep.subr.bf16.mxu0 %v4473_v9  ;;  %v4485_v22 = vld [vmem:[#allocation2 + $0x7c] ss:$12 sps:$4 sm:$0xff]   ;;  %v4487_v23 = vld [vmem:[#allocation2 + $0x78] ss:$12 sps:$4 sm:$0xff]  }
  0x85   : > { %v684_v1 = vunpack.c.l.bf16 %v683_v0  ;;  %4213 = vmatprep.subr.bf16.mxu1 %v4930_v4  ;;  %v4489_v25 = vld [vmem:[#allocation2 + $0x94] ss:$12 sps:$4 sm:$0xff]   ;;  %v4491_v27 = vld [vmem:[#allocation2 + $0x90] ss:$12 sps:$4 sm:$0xff]   ;;  %v4492_v28 = vld [vmem:[#allocation2 + $0x98] ss:$12 sps:$4 sm:$0xff]  }
  0x86   : > { %v4493_v29 = vld [vmem:[#allocation2 + $0xac] ss:$12 sps:$4 sm:$0xff]   ;;  %v4495_v30 = vld [vmem:[#allocation2 + $0xa8] ss:$12 sps:$4 sm:$0xff]   ;;  %v4496_v31 = vld [vmem:[#allocation2 + $0xb0] ss:$12 sps:$4 sm:$0xff]  }
  0x87   : > { %687 = vadd.xlane.f32.xlu0 %v684_v1  ;;  %899 = vmatpush1.bf16.msra.mxu0 %v4475_v14  ;;  %v3788_v36 = vld [vmem:[%s5641_s29] ss:$0 sm:$0xff]  ;;  %s5642_s21 = sld [smem:[#allocation23_spill]]  ;;  %v5213_v43 = vshrl.u32 %v751_v42, 7  ;;  %vm1063_vm1 = vcmask 1043456   ;;  %vm1000_vm2 = vcmask 523264  }
  0x88   : > { %4214 = vmatpush3.bf16.msra.mxu1 %v4476_v15  ;;  %900 = vmatprep.subr.bf16.mxu0 %v4477_v16  ;;  %v749_v45 = vld [vmem:[%s5581_s5] sm:$0x7]  ;;  %s4933_s19 = smov 64   ;;  %s5643_s30 = sld [smem:[#allocation21_spill]]  ;;  %vm1047_vm3 = vcmask 64512  }
  0x89   : > { %4215 = vmatprep.subr.bf16.mxu1 %v4930_v4  ;;  %v5216_v44 = vsub.s32 2, %v5213_v43  ;;  %v5222_v46 = vsub.s32 1, %v5213_v43  ;;  %v5225_v47 = vsub.s32 0, %v5213_v43  ;;  %s5644_s23 = sld [smem:[#allocation13_spill]]  ;;  %s5645_s10 = sld [smem:[#allocation26_spill]] }
  0x8a   : > { %s5646_s4 = sld [smem:[#allocation27_spill]]  ;;  %s4046_s28 = sshll.u32 %s5061_s2, 4 }
  0x8b   : > { %901 = vmatpush1.bf16.msra.mxu0 %v4479_v17  ;;  %v762_v48 = vrot.slane %v749_v45, %v5216_v44  ;;  %v758_v49 = vrot.slane %v749_v45, %v5222_v46  ;;  %v754_v50 = vrot.slane %v749_v45, %v5225_v47  ;;  %s5647_s1 = sld [smem:[#allocation18_spill]]  ;;  %s5648_s26 = sld [smem:[#allocation28_spill]] }
  0x8c   : > { %4216 = vmatpush3.bf16.msra.mxu1 %v4480_v18  ;;  %902 = vmatprep.subr.bf16.mxu0 %v4481_v19  ;;  %s4934_s27 = smov [#allocation8]  }
  0x8d   : > { %4217 = vmatprep.subr.bf16.mxu1 %v4930_v4  ;;  %v3789_v38 = vld [vmem:[%s5642_s21] ss:$0 sm:$0xff]  ;;  %s4853_s17 = sshll.u32 %s4934_s27, 4  ;;  %s4854_s17 = int_to_ptr.vmem [resolvable:$false] %s4853_s17 }
  0x8e   : > { %s681_s0 = scalar_lea.vmem %s5643_s30, %s5180_s25  ;;  %s4855_s22 = scalar_lea.vmem %s4854_s17, 32 }
  0x8f   : > { %903 = vmatpush1.bf16.msra.mxu0 %v4483_v20  ;;  %v713_v7 = vld [vmem:[%s681_s0] sm:$0x1]  ;;  %s673_s30 = sand.u32 1, %s5644_s23  }
  0x90   : > { %4218 = vmatpush3.bf16.msra.mxu1 %v4484_v21  ;;  %904 = vmatprep.subr.bf16.mxu0 %v4485_v22  ;;  %v714_v8 = vsub.f32 1.0, %v713_v7  ;;  %s3670_s23 = scalar_lea.sflag [#allocation4], %s673_s30 }
  0x91   : > { %4219 = vmatprep.subr.bf16.mxu1 %v4930_v4  ;;  %s5534_s21 = scalar_lea.hbm %s5648_s26, %s4046_s28  ;;  %p5649_p1 = scmp.ne.s32.totalorder %s5647_s1, 0 }
  0x92   : > { %v715_v9 = vmul.f32 -10000.0, %v714_v8 }
  0x93   : > { %905 = vmatpush1.bf16.msra.mxu0 %v4487_v23 }
  0x94   : > { %4220 = vmatpush3.bf16.msra.mxu1 %v4488_v24  ;;  %906 = vmatprep.subr.bf16.mxu0 %v4489_v25 }
  0x95   : > { %4221 = vmatprep.subr.bf16.mxu1 %v4930_v4 }
  0x97   : > { %907 = vmatpush1.bf16.msra.mxu0 %v4491_v27 }
  0x98   : > { %4222 = vmatpush3.bf16.msra.mxu1 %v4492_v28  ;;  %908 = vmatprep.subr.bf16.mxu0 %v4493_v29 }
  0x99   : > { %4223 = vmatprep.subr.bf16.mxu1 %v4930_v4 }
  0x9b   : > { %909 = vmatpush1.bf16.msra.mxu0 %v4495_v30 }
  0x9c   : > { %4224 = vmatpush3.bf16.msra.mxu1 %v4496_v31  ;;  %4229 = vmatprep.subr.bf16.mxu0 %v4930_v4 }
  0x9d   : > { %4235 = vmatprep.subr.bf16.mxu1 %v4930_v4 }
 0x114   : > { %v688_v10 = vpop.xlane.xlu0 %687 }
 0x115   : > { %v690_v11 = vmul.f32 0.0078125, %v688_v10  ;;  %v5249_v10 = vrot.slane %v715_v9, %v5225_v47  ;;  %v3828_v9 = vld [vmem:[%s5583_s7] ss:$0 sm:$0xff] }
 0x117   : > { %v691_v12 = vsub.f32 %v684_v1, %v690_v11 }
 0x119   : > { %v692_v13 = vmul.f32 %v691_v12, %v691_v12 }
 0x11b   : > { %693 = vadd.xlane.f32.xlu0 %v692_v13 }
 0x1a8   : > { %v694_v32 = vpop.xlane.xlu0 %693 }
 0x1a9   : > { %v695_v33 = vmul.f32 0.0078125, %v694_v32 }
 0x1ab   : > { %v696_v34 = vadd.f32 1e-12, %v695_v33 }
 0x1ad   : > { %4721 = vrsqrt.f32 %v696_v34 }
 0x1b7   : > { %v4722_v35 = vpop.eup %4721 }
 0x1b8   : > { %v698_v37 = vmul.f32 %v4722_v35, %v691_v12 }
 0x1ba   : > { %v705_v39 = vmul.f32 %v3788_v36, %v698_v37 }
 0x1bc   : > { %v5205_v40 = vadd.f32 %v3789_v38, %v705_v39  ;;  %v4501_v38 = vld [vmem:[%s5582_s6 + $0x20] sm:$0xff]   ;;  %v4502_v39 = vld [vmem:[%s5582_s6 + $0x28] sm:$0xff]  }
 0x1be   : > { %v716_v41 = vpack.c.bf16 %v5205_v40, %v5205_v40 }
 0x1c0   : > { %927 = vmatmul.mubr.bf16.vlgmr.msra.gmra.mrb[0].mxu0 %v716_v41  ;;  %4226 = vmatmul.mubr.bf16.vlgmr.msra.gmra.mrb[0].mxu1 %v716_v41  ;;  %v4503_v41 = vld [vmem:[%s5582_s6 + $0x30] sm:$0xff]  }
 0x1c1   : > { %4231 = vmatprep.mubr.msk.bf16.mxu0 %vm4932_vm0, %v4930_v4  ;;  %4237 = vmatprep.mubr.msk.bf16.mxu1 %vm4932_vm0, %v4930_v4 }
 0x293   : > { %v928_v51 = vpop.f32.mrb[0].mxu0  ;;  %v969_v52 = vpop.f32.mrb[0].mxu1 }
 0x294   : > { %v970_v53 = vadd.f32 %v969_v52, %v762_v48  ;;  %v930_v54 = vpop.f32.mrb[1].mxu0  ;;  %v4227_v55 = vpop.f32.mrb[1].mxu1  ;;  %v929_v62 = vadd.f32 %v928_v51, %v754_v50  ;;  %v4497_v51 = vld [vmem:[%s5582_s6] sm:$0xff]  }
 0x295   : > { %v931_v56 = vadd.f32 %v930_v54, %v758_v49  ;;  %v932_v57 = vpop.f32.mrb[2].mxu0  ;;  %v972_v58 = vpop.f32.mrb[2].mxu1  ;;  %v4499_v54 = vld [vmem:[%s5582_s6 + $0x10] sm:$0xff]   ;;  %v4500_v55 = vld [vmem:[%s5582_s6 + $0x18] sm:$0xff]  }
 0x296   : > { %v993_v59 = vpack.c.bf16 %v970_v53, %v970_v53  ;;  %v933_v60 = vpop.f32.mrb[3].mxu0  ;;  %v4228_v61 = vpop.f32.mrb[3].mxu1  ;;  %v991_v2 = vpack.c.bf16 %v929_v62, %v929_v62  ;;  %v4498_v53 = vld [vmem:[%s5582_s6 + $0x8] sm:$0xff]  }
 0x297   : > { %v992_v63 = vpack.c.bf16 %v931_v56, %v931_v56  ;;  %v4504_v56 = vld [vmem:[%s5582_s6 + $0x38] sm:$0xff]  }
 0x298   : > { %v1065_v0 = vsel %vm1063_vm1, %v993_v59, 0 }
 0x299   : > { %v1005_v1 = vsel %vm1000_vm2, %v992_v63, 0  ;;  %4236 = vmatpush3.bf16.msra.mxu1 %v1065_v0  ;;  %1112 = vrot.lane.b32.xlu1 %v992_v63, %s4933_s19 }
 0x29a   : > { %4230 = vmatpush3.bf16.xpose.msra.mxu0 %v1005_v1  ;;  %4247 = vmatprep.subr.bf16.mxu1 %v4930_v4 }
 0x29b   : > { %4241 = vmatprep.subr.bf16.mxu0 %v4930_v4 }
 0x29d   : > { %1109 = vrot.lane.b32.xlu1 %v991_v2, %s4933_s19 }
 0x2a1   : > { %4232 = vmatmul.mubr.msk.bf16.vlgmr.msra.gmra.mrb[4].mxu0 %vm1000_vm2, %v991_v2 }
 0x2a2   : > { %4243 = vmatprep.mubr.msk.bf16.mxu0 %vm4932_vm0, %v4930_v4 }
 0x30b   : > { %v1113_v3 = vpop.permute.xlu1 %1112 }
 0x30c   : > { %v1118_v5 = vsel %vm1000_vm2, %v1113_v3, 0 }
 0x30d   : > { %4242 = vmatpush3.bf16.xpose.msra.mxu0 %v1118_v5 }
 0x30e   : > { %4253 = vmatprep.subr.bf16.mxu0 %v4930_v4 }
 0x30f   : > { %v1110_v6 = vpop.permute.xlu1 %1109 }
 0x314   : > { %4244 = vmatmul.mubr.msk.bf16.vlgmr.msra.gmra.mrb[8].mxu0 %vm1000_vm2, %v1110_v6 }
 0x315   : > { %4261 = vmatprep.mubr.msk.bf16.mxu0 %vm4932_vm0, %v4930_v4  ;;  %4254 = vmatpush3.bf16.msra.mxu0 %v4501_v38  ;;  %v4534_v38 = vld [vmem:[#allocation5 + $0x8c] ss:$16 sps:$4 sm:$0xff]  }
 0x316   : > { %4255 = vmatprep.subr.bf16.mxu0 %v4930_v4 }
 0x319   : > { %4256 = vmatpush3.bf16.msra.mxu0 %v4502_v39  ;;  %v4529_v39 = vld [vmem:[#allocation5 + $0x80] ss:$16 sps:$4 sm:$0xff]  }
 0x31a   : > { %4257 = vmatprep.subr.bf16.mxu0 %v4930_v4 }
 0x31d   : > { %4258 = vmatpush3.bf16.msra.mxu0 %v4503_v41  ;;  %v4532_v41 = vld [vmem:[#allocation5 + $0x88] ss:$16 sps:$4 sm:$0xff]  }
 0x31e   : > { %4259 = vmatprep.subr.bf16.mxu0 %v4930_v4 }
 0x321   : > { %4260 = vmatpush3.bf16.msra.mxu0 %v4504_v56  ;;  %v4550_v56 = vld [vmem:[#allocation5 + $0xe8] ss:$16 sps:$4 sm:$0xff]  }
 0x374   : > { %v1041_v11 = vpop.f32.mrb[4].mxu0 }
 0x375   : > { %v1042_v12 = vadd.f32 %v1041_v11, %v5249_v10  ;;  %v4233_v13 = vpop.f32.mrb[5].mxu0 }
 0x376   : > { %v1044_v14 = vpop.f32.mrb[6].mxu0 }
 0x377   : > { %v4234_v15 = vpop.f32.mrb[7].mxu0  ;;  %v1048_v16 = vsel %vm1047_vm3, %v1042_v12, -inf }
 0x378   : > { %1049 = vmax.xlane.f32.xlu0 %v1048_v16 }
 0x3e7   : > { %v1154_v17 = vpop.f32.mrb[8].mxu0 }
 0x3e8   : > { %v1155_v18 = vadd.f32 %v1154_v17, %v5249_v10  ;;  %v4245_v19 = vpop.f32.mrb[9].mxu0  ;;  %v4505_v17 = vld [vmem:[#allocation5] ss:$16 sps:$4 sm:$0xff]  }
 0x3e9   : > { %v1157_v20 = vpop.f32.mrb[10].mxu0  ;;  %v4508_v19 = vld [vmem:[#allocation5 + $0x8] ss:$16 sps:$4 sm:$0xff]  }
 0x3ea   : > { %v4246_v21 = vpop.f32.mrb[11].mxu0  ;;  %v1160_v22 = vsel %vm1047_vm3, %v1155_v18, -inf  ;;  %v4510_v20 = vld [vmem:[#allocation5 + $0xc] ss:$16 sps:$4 sm:$0xff]  }
 0x3eb   : > { %1161 = vmax.xlane.f32.xlu1 %v1160_v22  ;;  %v4513_v21 = vld [vmem:[#allocation5 + $0x24] ss:$16 sps:$4 sm:$0xff]   ;;  %v4516_v22 = vld [vmem:[#allocation5 + $0x2c] ss:$16 sps:$4 sm:$0xff]  }
 0x405   : > { %v1050_v23 = vpop.xlane.xlu0 %1049 }
 0x406   : > { %v1051_v24 = vsub.f32 %v1042_v12, %v1050_v23  ;;  %v4511_v23 = vld [vmem:[#allocation5 + $0x20] ss:$16 sps:$4 sm:$0xff]  }
 0x408   : > { %v1052_v25 = vmul.f32 1.442695, %v1051_v24  ;;  %v4514_v24 = vld [vmem:[#allocation5 + $0x28] ss:$16 sps:$4 sm:$0xff]  }
 0x40a   : > { %4723 = vpow2.f32 %v1052_v25  ;;  %v4519_v25 = vld [vmem:[#allocation5 + $0x44] ss:$16 sps:$4 sm:$0xff]  }
 0x414   : > { %v4724_v27 = vpop.eup %4723 }
 0x415   : > { %v1054_v28 = vsel %vm1047_vm3, %v4724_v27, 0.0 }
 0x416   : > { %1055 = vadd.xlane.f32.xlu0 %v1054_v28  ;;  %v4517_v28 = vld [vmem:[#allocation5 + $0x40] ss:$16 sps:$4 sm:$0xff]  }
 0x478   : > { %v1162_v29 = vpop.xlane.xlu1 %1161 }
 0x479   : > { %v1163_v30 = vsub.f32 %v1155_v18, %v1162_v29  ;;  %v4507_v18 = vld [vmem:[#allocation5 + $0x4] ss:$16 sps:$4 sm:$0xff]  }
 0x47a   : > { %1607 = vmatprep.subr.bf16.mxu0 %v4507_v18  ;;  %v4565_v18 = vld [vmem:[#allocation7 + $0x58] sm:$0xff]  }
 0x47b   : > { %v1164_v31 = vmul.f32 1.442695, %v1163_v30 }
 0x47d   : > { %4725 = vpow2.f32 %v1164_v31 }
 0x487   : > { %v4726_v32 = vpop.eup %4725 }
 0x488   : > { %v1166_v33 = vsel %vm1047_vm3, %v4726_v32, 0.0 }
 0x489   : > { %1167 = vadd.xlane.f32.xlu0 %v1166_v33  ;;  %v4525_v33 = vld [vmem:[#allocation5 + $0x64] ss:$16 sps:$4 sm:$0xff]  }
 0x49f   : > { %1173 = vrot.lane.b32.xlu0 %v993_v59, %s4933_s19 }
 0x4a3   : > { %v1056_v34 = vpop.xlane.xlu0 %1055 }
 0x4a4   : > { %4727 = vrcp.f32 %v1056_v34  ;;  %v4528_v34 = vld [vmem:[#allocation5 + $0x6c] ss:$16 sps:$4 sm:$0xff]  }
 0x4ae   : > { %v4728_v35 = vpop.eup %4727 }
 0x4af   : > { %v1058_v36 = vmul.f32 %v4728_v35, %v4724_v27  ;;  %v4522_v27 = vld [vmem:[#allocation5 + $0x4c] ss:$16 sps:$4 sm:$0xff]   ;;  %v4523_v35 = vld [vmem:[#allocation5 + $0x60] ss:$16 sps:$4 sm:$0xff]  }
 0x4b1   : > { %v1059_v37 = vpack.c.bf16 %v1058_v36, %v1058_v36  ;;  %v4526_v36 = vld [vmem:[#allocation5 + $0x68] ss:$16 sps:$4 sm:$0xff]  }
 0x4b3   : > { %4238 = vmatmul.mubr.msk.bf16.vlgmr.msra.gmra.mrb[4].mxu1 %vm1047_vm3, %v1059_v37  ;;  %v4531_v37 = vld [vmem:[#allocation5 + $0x84] ss:$16 sps:$4 sm:$0xff]  }
 0x4b4   : > { %4249 = vmatprep.mubr.msk.bf16.mxu1 %vm4932_vm0, %v4930_v4 }
 0x516   : > { %v1168_v42 = vpop.xlane.xlu0 %1167 }
 0x517   : > { %4729 = vrcp.f32 %v1168_v42  ;;  %v4537_v42 = vld [vmem:[#allocation5 + $0xa4] ss:$16 sps:$4 sm:$0xff]  }
 0x51a   : > { %v1174_v45 = vpop.permute.xlu0 %1173 }
 0x51b   : > { %v1179_v48 = vsel %vm1063_vm1, %v1174_v45, 0  ;;  %v4540_v45 = vld [vmem:[#allocation5 + $0xac] ss:$16 sps:$4 sm:$0xff]  }
 0x51c   : > { %4248 = vmatpush3.bf16.msra.mxu1 %v1179_v48  ;;  %v4535_v48 = vld [vmem:[#allocation5 + $0xa0] ss:$16 sps:$4 sm:$0xff]  }
 0x51d   : > { %4265 = vmatprep.subr.bf16.mxu1 %v4930_v4 }
 0x521   : > { %v4730_v49 = vpop.eup %4729 }
 0x522   : > { %v1170_v50 = vmul.f32 %v4730_v49, %v4726_v32  ;;  %v4538_v49 = vld [vmem:[#allocation5 + $0xa8] ss:$16 sps:$4 sm:$0xff]  }
 0x524   : > { %v1171_v52 = vpack.c.bf16 %v1170_v50, %v1170_v50  ;;  %v4543_v50 = vld [vmem:[#allocation5 + $0xc4] ss:$16 sps:$4 sm:$0xff]  }
 0x526   : > { %4250 = vmatmul.mubr.msk.bf16.vlgmr.msra.gmra.mrb[8].mxu1 %vm1047_vm3, %v1171_v52  ;;  %v4541_v52 = vld [vmem:[#allocation5 + $0xc0] ss:$16 sps:$4 sm:$0xff]  }
 0x527   : > { %4266 = vmatpush3.bf16.msra.mxu1 %v4497_v51  ;;  %4273 = vmatprep.mubr.msk.bf16.mxu1 %vm4932_vm0, %v4930_v4  ;;  %v4546_v51 = vld [vmem:[#allocation5 + $0xcc] ss:$16 sps:$4 sm:$0xff]  }
 0x528   : > { %4267 = vmatprep.subr.bf16.mxu1 %v4930_v4 }
 0x52b   : > { %4268 = vmatpush3.bf16.msra.mxu1 %v4498_v53  ;;  %v4544_v53 = vld [vmem:[#allocation5 + $0xc8] ss:$16 sps:$4 sm:$0xff]  }
 0x52c   : > { %4269 = vmatprep.subr.bf16.mxu1 %v4930_v4 }
 0x52f   : > { %4270 = vmatpush3.bf16.msra.mxu1 %v4499_v54  ;;  %v4549_v54 = vld [vmem:[#allocation5 + $0xe4] ss:$16 sps:$4 sm:$0xff]  }
 0x530   : > { %4271 = vmatprep.subr.bf16.mxu1 %v4930_v4 }
 0x533   : > { %4272 = vmatpush3.bf16.msra.mxu1 %v4500_v55  ;;  %v4547_v55 = vld [vmem:[#allocation5 + $0xe0] ss:$16 sps:$4 sm:$0xff]  }
 0x534   : > { %1648 = vmatprep.subr.bf16.mxu1 %v4510_v20  ;;  %v4567_v20 = vld [vmem:[#allocation7 + $0x18] sm:$0xff]  }
 0x586   : > { %v1101_v57 = vpop.f32.mrb[4].mxu1 }
 0x587   : > { %v1107_v58 = vpack.c.bf16 %v1101_v57, %v1101_v57  ;;  %v4239_v59 = vpop.f32.mrb[5].mxu1  ;;  %v4552_v57 = vld [vmem:[#allocation5 + $0xec] ss:$16 sps:$4 sm:$0xff]  }
 0x588   : > { %v1104_v60 = vpop.f32.mrb[6].mxu1  ;;  %v4554_v59 = vld [vmem:[#allocation7 + $0xc0] sm:$0xff]  }
 0x589   : > { %v4240_v61 = vpop.f32.mrb[7].mxu1  ;;  %4274 = vmatmul.mubr.msk.bf16.vlgmr.msra.gmra.mrb[12].mxu1 %vm1000_vm2, %v1107_v58  ;;  %v4553_v58 = vld [vmem:[#allocation7 + $0x40] sm:$0xff]  }
 0x58a   : > { %1680 = vmatprep.mubr.bf16.mxu1 %v4931_v26  ;;  %1649 = vmatpush1.bf16.msra.mxu1 %v4508_v19  ;;  %v4566_v19 = vld [vmem:[#allocation7 + $0xd8] sm:$0xff]  }
 0x58b   : > { %1650 = vmatprep.subr.bf16.mxu1 %v4516_v22  ;;  %v4569_v22 = vld [vmem:[#allocation7 + $0x60] sm:$0xff]  }
 0x58e   : > { %1651 = vmatpush1.bf16.msra.mxu1 %v4514_v24  ;;  %v4571_v24 = vld [vmem:[#allocation7 + $0x20] sm:$0xff]  }
 0x58f   : > { %1652 = vmatprep.subr.bf16.mxu1 %v4522_v27  ;;  %v4573_v27 = vld [vmem:[#allocation7 + $0x68] sm:$0xff]  }
 0x5f9   : > { %v1215_v62 = vpop.f32.mrb[8].mxu1 }
 0x5fa   : > { %v1221_v63 = vpack.c.bf16 %v1215_v62, %v1215_v62  ;;  %v4251_v0 = vpop.f32.mrb[9].mxu1 }
 0x5fb   : > { %v1218_v1 = vpop.f32.mrb[10].mxu1  ;;  %v3829_v0 = vld [vmem:[%s5584_s8] ss:$0 sm:$0xff] }
 0x5fc   : > { %v4252_v2 = vpop.f32.mrb[11].mxu1  ;;  %4262 = vmatmul.mubr.msk.bf16.vlgmr.msra.gmra.mrb[12].mxu0 %vm1000_vm2, %v1221_v63 }
 0x5fd   : > { %1639 = vmatprep.mubr.bf16.mxu0 %v4931_v26  ;;  %1608 = vmatpush1.bf16.msra.mxu0 %v4505_v17  ;;  %v3830_v2 = vld [vmem:[%s5585_s9] ss:$0 sm:$0xff]  ;;  %v4564_v17 = vld [vmem:[#allocation7 + $0x90] sm:$0xff]  }
 0x5fe   : > { %1609 = vmatprep.subr.bf16.mxu0 %v4513_v21  ;;  %v4568_v21 = vld [vmem:[#allocation7 + $0x98] sm:$0xff]  }
 0x601   : > { %1610 = vmatpush1.bf16.msra.mxu0 %v4511_v23  ;;  %v4570_v23 = vld [vmem:[#allocation7 + $0xe0] sm:$0xff]  }
 0x602   : > { %1611 = vmatprep.subr.bf16.mxu0 %v4519_v25  ;;  %v4572_v25 = vld [vmem:[#allocation7 + $0xa0] sm:$0xff]  }
 0x605   : > { %1612 = vmatpush1.bf16.msra.mxu0 %v4517_v28  ;;  %v4574_v28 = vld [vmem:[#allocation7 + $0xe8] sm:$0xff]  }
 0x606   : > { %1613 = vmatprep.subr.bf16.mxu0 %v4525_v33  ;;  %v4580_v33 = vld [vmem:[#allocation7 + $0xb0] sm:$0xff]  }
 0x609   : > { %1614 = vmatpush1.bf16.msra.mxu0 %v4523_v35  ;;  %v4582_v35 = vld [vmem:[#allocation7 + $0xf8] sm:$0xff]  }
 0x60a   : > { %1615 = vmatprep.subr.bf16.mxu0 %v4531_v37  ;;  %v4584_v37 = vld [vmem:[#allocation7 + $0xb8] sm:$0xff]  }
 0x60d   : > { %1616 = vmatpush1.bf16.msra.mxu0 %v4529_v39  ;;  %v1441_v39 = vsub.s32 3, %v5213_v43 }
 0x60e   : > { %1617 = vmatprep.subr.bf16.mxu0 %v4537_v42 }
 0x611   : > { %1618 = vmatpush1.bf16.msra.mxu0 %v4535_v48 }
 0x612   : > { %1619 = vmatprep.subr.bf16.mxu0 %v4543_v50 }
 0x615   : > { %1620 = vmatpush1.bf16.msra.mxu0 %v4541_v52 }
 0x616   : > { %1621 = vmatprep.subr.bf16.mxu0 %v4549_v54 }
 0x619   : > { %1622 = vmatpush1.bf16.msra.mxu0 %v4547_v55 }
 0x61a   : > { %4076 = vmatprep.subr.bf16.mxu0 %v4553_v58 }
 0x65c   : > { %v1350_v3 = vpop.f32.mrb[12].mxu1 }
 0x65d   : > { %v4275_v5 = vpop.f32.mrb[13].mxu1 }
 0x65e   : > { %v1353_v6 = vpop.f32.mrb[14].mxu1 }
 0x65f   : > { %v4276_v7 = vpop.f32.mrb[15].mxu1  ;;  %v4555_v6 = vld [vmem:[#allocation7] sm:$0xff]  }
 0x660   : > { %v4556_v7 = vld [vmem:[#allocation7 + $0x80] sm:$0xff]  }
 0x6cf   : > { %v1283_v8 = vpop.f32.mrb[12].mxu0 }
 0x6d0   : > { %v1351_v11 = vadd.f32 %v1350_v3, %v1283_v8  ;;  %v4263_v12 = vpop.f32.mrb[13].mxu0 }
 0x6d1   : > { %v1286_v13 = vpop.f32.mrb[14].mxu0  ;;  %v4559_v12 = vld [vmem:[#allocation7 + $0x8] sm:$0xff]  }
 0x6d2   : > { %v1363_v14 = vadd.f32 %v3828_v9, %v1351_v11  ;;  %v4264_v15 = vpop.f32.mrb[15].mxu0  ;;  %v4557_v9 = vld [vmem:[#allocation7 + $0x48] sm:$0xff]  }
 0x6d3   : > { %v4558_v11 = vld [vmem:[#allocation7 + $0xc8] sm:$0xff]   ;;  %v4562_v15 = vld [vmem:[#allocation7 + $0xd0] sm:$0xff]  }
 0x6d4   : > { %v1364_v16 = vadd.f32 %v1363_v14, %v5205_v40  ;;  %v4520_v40 = vld [vmem:[#allocation5 + $0x48] ss:$16 sps:$4 sm:$0xff]   ;;  %v4561_v14 = vld [vmem:[#allocation7 + $0x50] sm:$0xff]  }
 0x6d5   : > { %1653 = vmatpush1.bf16.msra.mxu1 %v4520_v40  ;;  %v4560_v13 = vld [vmem:[#allocation7 + $0x88] sm:$0xff]  }
 0x6d6   : > { %1367 = vadd.xlane.f32.xlu0 %v1364_v16  ;;  %1654 = vmatprep.subr.bf16.mxu1 %v4528_v34  ;;  %v4575_v40 = vld [vmem:[#allocation7 + $0x28] sm:$0xff]   ;;  %v4581_v34 = vld [vmem:[#allocation7 + $0x78] sm:$0xff]  }
 0x6d9   : > { %1655 = vmatpush1.bf16.msra.mxu1 %v4526_v36  ;;  %v4583_v36 = vld [vmem:[#allocation7 + $0x38] sm:$0xff]  }
 0x6da   : > { %1656 = vmatprep.subr.bf16.mxu1 %v4534_v38  ;;  %v1425_v38 = vld [vmem:[%s5587_s11] sm:$0xf] }
 0x6db   : > { %v1438_v42 = vrot.slane %v1425_v38, %v5216_v44  ;;  %v1442_v48 = vrot.slane %v1425_v38, %v1441_v39 }
 0x6dd   : > { %1657 = vmatpush1.bf16.msra.mxu1 %v4532_v41  ;;  %v1430_v41 = vrot.slane %v1425_v38, %v5225_v47 }
 0x6de   : > { %1658 = vmatprep.subr.bf16.mxu1 %v4540_v45  ;;  %v1434_v45 = vrot.slane %v1425_v38, %v5222_v46  ;;  %v4585_v38 = vld [vmem:[#allocation2 + $0xc0] ss:$12 sps:$4 sm:$0xff]  }
 0x6e1   : > { %1659 = vmatpush1.bf16.msra.mxu1 %v4538_v49 }
 0x6e2   : > { %1660 = vmatprep.subr.bf16.mxu1 %v4546_v51 }
 0x6e5   : > { %1661 = vmatpush1.bf16.msra.mxu1 %v4544_v53 }
 0x6e6   : > { %1662 = vmatprep.subr.bf16.mxu1 %v4552_v57 }
 0x6e9   : > { %1663 = vmatpush1.bf16.msra.mxu1 %v4550_v56 }
 0x6ea   : > { %4098 = vmatprep.subr.bf16.mxu1 %v4554_v59 }
 0x763   : > { %v1368_v29 = vpop.xlane.xlu0 %1367 }
 0x764   : > { %v1369_v30 = vmul.f32 0.0078125, %v1368_v29  ;;  %v4576_v29 = vld [vmem:[#allocation7 + $0xa8] sm:$0xff]  }
 0x766   : > { %v1370_v31 = vsub.f32 %v1364_v16, %v1369_v30  ;;  %v4563_v16 = vld [vmem:[#allocation7 + $0x10] sm:$0xff]  }
 0x767   : > { %v4577_v30 = vld [vmem:[#allocation7 + $0x70] sm:$0xff]  }
 0x768   : > { %v1371_v32 = vmul.f32 %v1370_v31, %v1370_v31 }
 0x76a   : > { %1372 = vadd.xlane.f32.xlu1 %v1371_v32  ;;  %v4579_v32 = vld [vmem:[#allocation7 + $0x30] sm:$0xff]  }
 0x7f7   : > { %v1373_v60 = vpop.xlane.xlu1 %1372 }
 0x7f8   : > { %v1374_v61 = vmul.f32 0.0078125, %v1373_v60 }
 0x7fa   : > { %v1375_v62 = vadd.f32 1e-12, %v1374_v61 }
 0x7fc   : > { %4731 = vrsqrt.f32 %v1375_v62 }
 0x806   : > { %v4732_v63 = vpop.eup %4731 }
 0x807   : > { %v1377_v1 = vmul.f32 %v4732_v63, %v1370_v31  ;;  %v4578_v31 = vld [vmem:[#allocation7 + $0xf0] sm:$0xff]  }
 0x809   : > { %v1384_v3 = vmul.f32 %v3829_v0, %v1377_v1 }
 0x80b   : > { %v5310_v5 = vadd.f32 %v3830_v2, %v1384_v3 }
 0x80d   : > { %v1392_v8 = vpack.c.bf16 %v5310_v5, %v5310_v5 }
 0x80f   : > { %1640 = vmatmul.mubr.bf16.vlgmr.msra.gmra.mrb[16].mxu0 %v1392_v8  ;;  %1681 = vmatmul.mubr.bf16.vlgmr.msra.gmra.mrb[16].mxu1 %v1392_v8 }
 0x810   : > { %4077 = vmatpush3.bf16.msra.mxu0 %v4555_v6  ;;  %4099 = vmatpush3.bf16.msra.mxu1 %v4556_v7 }
 0x811   : > { %4078 = vmatprep.subr.bf16.mxu0 %v4557_v9  ;;  %4100 = vmatprep.subr.bf16.mxu1 %v4558_v11 }
 0x814   : > { %4079 = vmatpush3.bf16.msra.mxu0 %v4559_v12  ;;  %4101 = vmatpush3.bf16.msra.mxu1 %v4560_v13 }
 0x815   : > { %4080 = vmatprep.subr.bf16.mxu0 %v4561_v14  ;;  %4102 = vmatprep.subr.bf16.mxu1 %v4562_v15 }
 0x818   : > { %4081 = vmatpush3.bf16.msra.mxu0 %v4563_v16  ;;  %4103 = vmatpush3.bf16.msra.mxu1 %v4564_v17 }
 0x819   : > { %4082 = vmatprep.subr.bf16.mxu0 %v4565_v18  ;;  %4104 = vmatprep.subr.bf16.mxu1 %v4566_v19 }
 0x81c   : > { %4083 = vmatpush3.bf16.msra.mxu0 %v4567_v20  ;;  %4105 = vmatpush3.bf16.msra.mxu1 %v4568_v21 }
 0x81d   : > { %4084 = vmatprep.subr.bf16.mxu0 %v4569_v22  ;;  %4106 = vmatprep.subr.bf16.mxu1 %v4570_v23 }
 0x820   : > { %4085 = vmatpush3.bf16.msra.mxu0 %v4571_v24  ;;  %4107 = vmatpush3.bf16.msra.mxu1 %v4572_v25 }
 0x821   : > { %4086 = vmatprep.subr.bf16.mxu0 %v4573_v27  ;;  %4108 = vmatprep.subr.bf16.mxu1 %v4574_v28  ;;  %v3863_v27 = vld [vmem:[%s5589_s13] ss:$0 sm:$0xff] }
 0x824   : > { %4087 = vmatpush3.bf16.msra.mxu0 %v4575_v40  ;;  %4109 = vmatpush3.bf16.msra.mxu1 %v4576_v29 }
 0x825   : > { %4088 = vmatprep.subr.bf16.mxu0 %v4577_v30  ;;  %4110 = vmatprep.subr.bf16.mxu1 %v4578_v31 }
 0x828   : > { %4089 = vmatpush3.bf16.msra.mxu0 %v4579_v32  ;;  %4111 = vmatpush3.bf16.msra.mxu1 %v4580_v33 }
 0x829   : > { %4090 = vmatprep.subr.bf16.mxu0 %v4581_v34  ;;  %4112 = vmatprep.subr.bf16.mxu1 %v4582_v35 }
 0x82c   : > { %4091 = vmatpush3.bf16.msra.mxu0 %v4583_v36  ;;  %4113 = vmatpush3.bf16.msra.mxu1 %v4584_v37 }
 0x82d   : > { %4277 = vmatprep.subr.bf16.mxu1 %v4930_v4 }
 0x8e2   : > { %v1641_v49 = vpop.f32.mrb[16].mxu0  ;;  %v1682_v50 = vpop.f32.mrb[16].mxu1 }
 0x8e3   : > { %v1642_v51 = vadd.f32 %v1641_v49, %v1430_v41  ;;  %v1683_v52 = vadd.f32 %v1682_v50, %v1438_v42  ;;  %v1643_v53 = vpop.f32.mrb[17].mxu0  ;;  %v1684_v54 = vpop.f32.mrb[17].mxu1  ;;  %v4587_v41 = vld [vmem:[#allocation2 + $0xc4] ss:$12 sps:$4 sm:$0xff]   ;;  %v4588_v42 = vld [vmem:[#allocation2 + $0xc8] ss:$12 sps:$4 sm:$0xff]  }
 0x8e4   : > { %v1644_v55 = vadd.f32 %v1643_v53, %v1434_v45  ;;  %v1685_v56 = vadd.f32 %v1684_v54, %v1442_v48  ;;  %v1645_v57 = vpop.f32.mrb[18].mxu0  ;;  %v1686_v58 = vpop.f32.mrb[18].mxu1  ;;  %v4591_v45 = vld [vmem:[#allocation2 + $0xdc] ss:$12 sps:$4 sm:$0xff]   ;;  %2264 = vmatprep.subr.bf16.mxu0 %v4587_v41  ;;  %v4592_v48 = vld [vmem:[#allocation2 + $0xe0] ss:$12 sps:$4 sm:$0xff]  }
 0x8e5   : > { %v1693_v59 = vmul.f32 0.70710677, %v1642_v51  ;;  %v1695_v60 = vmul.f32 0.70710677, %v1683_v52  ;;  %v1646_v63 = vpop.f32.mrb[19].mxu0  ;;  %v1687_v0 = vpop.f32.mrb[19].mxu1 }
 0x8e6   : > { %v1694_v61 = vmul.f32 0.70710677, %v1644_v55  ;;  %v1696_v62 = vmul.f32 0.70710677, %v1685_v56  ;;  %v1689_v7 = vmul.f32 0.5, %v1642_v51  ;;  %v1691_v11 = vmul.f32 0.5, %v1683_v52 }
 0x8e7   : > { %4733 = verf.f32 %v1693_v59  ;;  %v1690_v12 = vmul.f32 0.5, %v1644_v55  ;;  %v1692_v15 = vmul.f32 0.5, %v1685_v56  ;;  %v4589_v49 = vld [vmem:[#allocation2 + $0xd8] ss:$12 sps:$4 sm:$0xff]   ;;  %v4595_v50 = vld [vmem:[#allocation2 + $0xf4] ss:$12 sps:$4 sm:$0xff]  }
 0x8e8   : > { %4735 = verf.f32 %v1695_v60  ;;  %v4593_v51 = vld [vmem:[#allocation2 + $0xf0] ss:$12 sps:$4 sm:$0xff]   ;;  %v4596_v55 = vld [vmem:[#allocation2 + $0xf8] ss:$12 sps:$4 sm:$0xff]   ;;  %v4597_v57 = vld [vmem:[#allocation2 + $0x108] ss:$12 sps:$4 sm:$0xff]  }
 0x8e9   : > { %4737 = verf.f32 %v1694_v61  ;;  %v4599_v56 = vld [vmem:[#allocation2 + $0x10c] ss:$12 sps:$4 sm:$0xff]   ;;  %v4600_v58 = vld [vmem:[#allocation2 + $0x110] ss:$12 sps:$4 sm:$0xff]   ;;  %v4604_v61 = vld [vmem:[#allocation2 + $0x128] ss:$12 sps:$4 sm:$0xff]  }
 0x8ea   : > { %4739 = verf.f32 %v1696_v62  ;;  %v4603_v59 = vld [vmem:[#allocation2 + $0x124] ss:$12 sps:$4 sm:$0xff]   ;;  %v4601_v60 = vld [vmem:[#allocation2 + $0x120] ss:$12 sps:$4 sm:$0xff]   ;;  %v4607_v62 = vld [vmem:[#allocation2 + $0x13c] ss:$12 sps:$4 sm:$0xff]  }
 0x8eb   : > { %v4605_v63 = vld [vmem:[#allocation2 + $0x138] ss:$12 sps:$4 sm:$0xff]   ;;  %v4608_v0 = vld [vmem:[#allocation2 + $0x140] ss:$12 sps:$4 sm:$0xff]  }
 0x8f1   : > { %v4734_v1 = vpop.eup %4733 }
 0x8f2   : > { %v4736_v2 = vpop.eup %4735  ;;  %v1701_v3 = vadd.f32 1.0, %v4734_v1  ;;  %v4611_v1 = vld [vmem:[#allocation2 + $0x154] ss:$12 sps:$4 sm:$0xff]  }
 0x8f3   : > { %v4738_v6 = vpop.eup %4737  ;;  %v1703_v8 = vadd.f32 1.0, %v4736_v2  ;;  %v4609_v2 = vld [vmem:[#allocation2 + $0x150] ss:$12 sps:$4 sm:$0xff]  }
 0x8f4   : > { %v4740_v9 = vpop.eup %4739  ;;  %v1702_v13 = vadd.f32 1.0, %v4738_v6  ;;  %v1705_v14 = vmul.f32 %v1701_v3, %v1689_v7  ;;  %v4612_v3 = vld [vmem:[#allocation2 + $0x158] ss:$12 sps:$4 sm:$0xff]   ;;  %v4613_v7 = vld [vmem:[#allocation2 + $0x168] ss:$12 sps:$4 sm:$0xff]  }
 0x8f5   : > { %v1704_v16 = vadd.f32 1.0, %v4740_v9  ;;  %v1707_v17 = vmul.f32 %v1703_v8, %v1691_v11  ;;  %v4615_v6 = vld [vmem:[#allocation2 + $0x16c] ss:$12 sps:$4 sm:$0xff]   ;;  %v4616_v8 = vld [vmem:[#allocation2 + $0x170] ss:$12 sps:$4 sm:$0xff]  }
 0x8f6   : > { %v1706_v18 = vmul.f32 %v1702_v13, %v1690_v12  ;;  %v1709_v21 = vpack.c.bf16 %v1705_v14, %v1705_v14  ;;  %v3896_v14 = vld [vmem:[%s5590_s14] ss:$0 sm:$0xff] }
 0x8f7   : > { %v1708_v19 = vmul.f32 %v1704_v16, %v1692_v15  ;;  %v1711_v23 = vpack.c.bf16 %v1707_v17, %v1707_v17  ;;  %v3897_v16 = vld [vmem:[%s5591_s15] ss:$0 sm:$0xff] }
 0x8f8   : > { %v1710_v20 = vpack.c.bf16 %v1706_v18, %v1706_v18 }
 0x8f9   : > { %v1712_v22 = vpack.c.bf16 %v1708_v19, %v1708_v19 }
 0x8fa   : > { %2008 = vmatprep.mubr.bf16.mxu0 %v1710_v20  ;;  %v3898_v20 = vld [vmem:[%s5581_s5 + $0x3] sm:$0x7] }
 0x8fb   : > { %2048 = vmatprep.mubr.bf16.mxu1 %v1712_v22  ;;  %2009 = vmatmul.mubr.bf16.vlgmr.msra.gmra.mrb[20].mxu0 %v1709_v21  ;;  %v2124_v21 = vrot.slane %v3898_v20, %v5225_v47  ;;  %v2132_v22 = vrot.slane %v3898_v20, %v5216_v44 }
 0x8fc   : > { %2049 = vmatmul.mubr.bf16.vlgmr.msra.gmra.mrb[20].mxu1 %v1711_v23  ;;  %2296 = vmatprep.mubr.bf16.mxu0 %v4931_v26  ;;  %v2128_v23 = vrot.slane %v3898_v20, %v5222_v46 }
 0x8fd   : > { %4293 = vmatprep.mubr.msk.bf16.mxu1 %vm4932_vm0, %v4930_v4  ;;  %4278 = vmatpush3.bf16.msra.mxu1 %v4588_v42 }
 0x8fe   : > { %2265 = vmatpush1.bf16.msra.mxu0 %v4585_v38  ;;  %4279 = vmatprep.subr.bf16.mxu1 %v4930_v4 }
 0x8ff   : > { %2266 = vmatprep.subr.bf16.mxu0 %v4591_v45 }
 0x901   : > { %4280 = vmatpush3.bf16.msra.mxu1 %v4592_v48 }
 0x902   : > { %2267 = vmatpush1.bf16.msra.mxu0 %v4589_v49  ;;  %4281 = vmatprep.subr.bf16.mxu1 %v4930_v4 }
 0x903   : > { %2268 = vmatprep.subr.bf16.mxu0 %v4595_v50 }
 0x905   : > { %4282 = vmatpush3.bf16.msra.mxu1 %v4596_v55 }
 0x906   : > { %2269 = vmatpush1.bf16.msra.mxu0 %v4593_v51  ;;  %4283 = vmatprep.subr.bf16.mxu1 %v4930_v4 }
 0x907   : > { %2270 = vmatprep.subr.bf16.mxu0 %v4599_v56 }
 0x909   : > { %4284 = vmatpush3.bf16.msra.mxu1 %v4600_v58 }
 0x90a   : > { %2271 = vmatpush1.bf16.msra.mxu0 %v4597_v57  ;;  %4285 = vmatprep.subr.bf16.mxu1 %v4930_v4 }
 0x90b   : > { %2272 = vmatprep.subr.bf16.mxu0 %v4603_v59 }
 0x90d   : > { %4286 = vmatpush3.bf16.msra.mxu1 %v4604_v61 }
 0x90e   : > { %2273 = vmatpush1.bf16.msra.mxu0 %v4601_v60  ;;  %4287 = vmatprep.subr.bf16.mxu1 %v4930_v4 }
 0x90f   : > { %2274 = vmatprep.subr.bf16.mxu0 %v4607_v62 }
 0x911   : > { %4288 = vmatpush3.bf16.msra.mxu1 %v4608_v0 }
 0x912   : > { %2275 = vmatpush1.bf16.msra.mxu0 %v4605_v63  ;;  %4289 = vmatprep.subr.bf16.mxu1 %v4930_v4 }
 0x913   : > { %2276 = vmatprep.subr.bf16.mxu0 %v4611_v1 }
 0x915   : > { %4290 = vmatpush3.bf16.msra.mxu1 %v4612_v3 }
 0x916   : > { %2277 = vmatpush1.bf16.msra.mxu0 %v4609_v2  ;;  %4291 = vmatprep.subr.bf16.mxu1 %v4930_v4 }
 0x917   : > { %2278 = vmatprep.subr.bf16.mxu0 %v4615_v6 }
 0x919   : > { %4292 = vmatpush3.bf16.msra.mxu1 %v4616_v8 }
 0x91a   : > { %2279 = vmatpush1.bf16.msra.mxu0 %v4613_v7  ;;  %4303 = vmatprep.subr.bf16.mxu1 %v4930_v4 }
 0x91b   : > { %4297 = vmatprep.subr.bf16.mxu0 %v4930_v4 }
 0x9ce   : > { %v4092_v24 = vpop.f32.mrb[20].mxu0 }
 0x9cf   : > { %v4114_v25 = vpop.f32.mrb[20].mxu1  ;;  %v4093_v28 = vpop.f32.mrb[21].mxu0 }
 0x9d0   : > { %v4094_v40 = vadd.f32 %v4093_v28, %v4092_v24  ;;  %v4115_v29 = vpop.f32.mrb[21].mxu1  ;;  %v4095_v30 = vpop.f32.mrb[22].mxu0 }
 0x9d1   : > { %v4116_v31 = vadd.f32 %v4115_v29, %v4114_v25  ;;  %v4117_v32 = vpop.f32.mrb[22].mxu1  ;;  %v4096_v33 = vpop.f32.mrb[23].mxu0 }
 0x9d2   : > { %v2011_v34 = vadd.f32 %v4094_v40, %v3863_v27  ;;  %v4118_v35 = vpop.f32.mrb[23].mxu1 }
 0x9d4   : > { %v2051_v36 = vadd.f32 %v4116_v31, %v2011_v34 }
 0x9d6   : > { %v2056_v37 = vadd.f32 %v2051_v36, %v5310_v5 }
 0x9d8   : > { %2059 = vadd.xlane.f32.xlu1 %v2056_v37 }
 0xa65   : > { %v2060_v5 = vpop.xlane.xlu1 %2059 }
 0xa66   : > { %v2061_v52 = vmul.f32 0.0078125, %v2060_v5 }
 0xa68   : > { %v2062_v53 = vsub.f32 %v2056_v37, %v2061_v52 }
 0xa6a   : > { %v2063_v54 = vmul.f32 %v2062_v53, %v2062_v53 }
 0xa6c   : > { %2064 = vadd.xlane.f32.xlu1 %v2063_v54 }
 0xaf9   : > { %v2065_v9 = vpop.xlane.xlu1 %2064 }
 0xafa   : > { %v2066_v11 = vmul.f32 0.0078125, %v2065_v9 }
 0xafc   : > { %v2067_v12 = vadd.f32 1e-12, %v2066_v11 }
 0xafe   : > { %4741 = vrsqrt.f32 %v2067_v12  ;;  %v4621_v12 = vld [vmem:[%s5582_s6 + $0x60] sm:$0xff]  }
 0xb08   : > { %v4742_v13 = vpop.eup %4741 }
 0xb09   : > { %v2069_v15 = vmul.f32 %v4742_v13, %v2062_v53  ;;  %v4622_v13 = vld [vmem:[%s5582_s6 + $0x68] sm:$0xff]  }
 0xb0b   : > { %v2076_v17 = vmul.f32 %v3896_v14, %v2069_v15  ;;  %v4623_v14 = vld [vmem:[%s5582_s6 + $0x70] sm:$0xff]  }
 0xb0d   : > { %v5346_v18 = vadd.f32 %v3897_v16, %v2076_v17 }
 0xb0f   : > { %v2084_v19 = vpack.c.bf16 %v5346_v18, %v5346_v18 }
 0xb11   : > { %2297 = vmatmul.mubr.bf16.vlgmr.msra.gmra.mrb[24].mxu0 %v2084_v19  ;;  %4294 = vmatmul.mubr.bf16.vlgmr.msra.gmra.mrb[24].mxu1 %v2084_v19 }
 0xb12   : > { %4299 = vmatprep.mubr.msk.bf16.mxu0 %vm4932_vm0, %v4930_v4  ;;  %4305 = vmatprep.mubr.msk.bf16.mxu1 %vm4932_vm0, %v4930_v4 }
 0xbe4   : > { %v2298_v24 = vpop.f32.mrb[24].mxu0  ;;  %v2339_v25 = vpop.f32.mrb[24].mxu1 }
 0xbe5   : > { %v2299_v27 = vadd.f32 %v2298_v24, %v2124_v21  ;;  %v2340_v28 = vadd.f32 %v2339_v25, %v2132_v22  ;;  %v2300_v40 = vpop.f32.mrb[25].mxu0  ;;  %v4295_v29 = vpop.f32.mrb[25].mxu1  ;;  %v4617_v21 = vld [vmem:[%s5582_s6 + $0x40] sm:$0xff]   ;;  %v4619_v24 = vld [vmem:[%s5582_s6 + $0x50] sm:$0xff]   ;;  %v4620_v25 = vld [vmem:[%s5582_s6 + $0x58] sm:$0xff]  }
 0xbe6   : > { %v2301_v30 = vadd.f32 %v2300_v40, %v2128_v23  ;;  %v2302_v31 = vpop.f32.mrb[26].mxu0  ;;  %v2342_v32 = vpop.f32.mrb[26].mxu1  ;;  %v4618_v23 = vld [vmem:[%s5582_s6 + $0x48] sm:$0xff]  }
 0xbe7   : > { %v2362_v33 = vpack.c.bf16 %v2299_v27, %v2299_v27  ;;  %v2364_v34 = vpack.c.bf16 %v2340_v28, %v2340_v28  ;;  %v2303_v35 = vpop.f32.mrb[27].mxu0  ;;  %v4296_v36 = vpop.f32.mrb[27].mxu1  ;;  %v4624_v27 = vld [vmem:[%s5582_s6 + $0x78] sm:$0xff]  }
 0xbe8   : > { %v2363_v37 = vpack.c.bf16 %v2301_v30, %v2301_v30 }
 0xbe9   : > { %v2427_v38 = vsel %vm1063_vm1, %v2364_v34, 0  ;;  %2471 = vrot.lane.b32.xlu0 %v2362_v33, %s4933_s19 }
 0xbea   : > { %v2369_v41 = vsel %vm1000_vm2, %v2363_v37, 0  ;;  %4304 = vmatpush3.bf16.msra.mxu1 %v2427_v38  ;;  %2474 = vrot.lane.b32.xlu1 %v2363_v37, %s4933_s19 }
 0xbeb   : > { %4298 = vmatpush3.bf16.xpose.msra.mxu0 %v2369_v41  ;;  %4315 = vmatprep.subr.bf16.mxu1 %v4930_v4 }
 0xbec   : > { %4309 = vmatprep.subr.bf16.mxu0 %v4930_v4 }
 0xbf2   : > { %4300 = vmatmul.mubr.msk.bf16.vlgmr.msra.gmra.mrb[28].mxu0 %vm1000_vm2, %v2362_v33 }
 0xbf3   : > { %4311 = vmatprep.mubr.msk.bf16.mxu0 %vm4932_vm0, %v4930_v4 }
 0xc5b   : > { %v2472_v48 = vpop.permute.xlu0 %2471 }
 0xc5c   : > { %v2475_v42 = vpop.permute.xlu1 %2474 }
 0xc5d   : > { %v2480_v45 = vsel %vm1000_vm2, %v2475_v42, 0 }
 0xc5e   : > { %4310 = vmatpush3.bf16.xpose.msra.mxu0 %v2480_v45 }
 0xc5f   : > { %4321 = vmatprep.subr.bf16.mxu0 %v4930_v4 }
 0xc65   : > { %4312 = vmatmul.mubr.msk.bf16.vlgmr.msra.gmra.mrb[32].mxu0 %vm1000_vm2, %v2472_v48  ;;  %v3954_v48 = vld [vmem:[%s5583_s7 + $0x1] ss:$0 sm:$0xff] }
 0xc66   : > { %4329 = vmatprep.mubr.msk.bf16.mxu0 %vm4932_vm0, %v4930_v4  ;;  %4322 = vmatpush3.bf16.msra.mxu0 %v4621_v12  ;;  %v4649_v12 = vld [vmem:[#allocation5 + $0x180] ss:$16 sps:$4 sm:$0xff]  }
 0xc67   : > { %4323 = vmatprep.subr.bf16.mxu0 %v4930_v4 }
 0xc6a   : > { %4324 = vmatpush3.bf16.msra.mxu0 %v4622_v13  ;;  %v4652_v13 = vld [vmem:[#allocation5 + $0x188] ss:$16 sps:$4 sm:$0xff]  }
 0xc6b   : > { %4325 = vmatprep.subr.bf16.mxu0 %v4930_v4 }
 0xc6e   : > { %4326 = vmatpush3.bf16.msra.mxu0 %v4623_v14  ;;  %v4657_v14 = vld [vmem:[#allocation5 + $0x1a4] ss:$16 sps:$4 sm:$0xff]  }
 0xc6f   : > { %4327 = vmatprep.subr.bf16.mxu0 %v4930_v4 }
 0xc72   : > { %4328 = vmatpush3.bf16.msra.mxu0 %v4624_v27  ;;  %v4670_v27 = vld [vmem:[#allocation5 + $0x1e8] ss:$16 sps:$4 sm:$0xff]  }
 0xcc5   : > { %v2405_v49 = vpop.f32.mrb[28].mxu0 }
 0xcc6   : > { %v2406_v50 = vadd.f32 %v2405_v49, %v5249_v10  ;;  %v4301_v51 = vpop.f32.mrb[29].mxu0 }
 0xcc7   : > { %v2408_v5 = vpop.f32.mrb[30].mxu0 }
 0xcc8   : > { %v4302_v52 = vpop.f32.mrb[31].mxu0  ;;  %v2411_v53 = vsel %vm1047_vm3, %v2406_v50, -inf }
 0xcc9   : > { %2412 = vmax.xlane.f32.xlu1 %v2411_v53 }
 0xd38   : > { %v2516_v54 = vpop.f32.mrb[32].mxu0 }
 0xd39   : > { %v2517_v55 = vadd.f32 %v2516_v54, %v5249_v10  ;;  %v4313_v56 = vpop.f32.mrb[33].mxu0  ;;  %v4625_v54 = vld [vmem:[#allocation5 + $0x100] ss:$16 sps:$4 sm:$0xff]  }
 0xd3a   : > { %v2519_v57 = vpop.f32.mrb[34].mxu0  ;;  %v4630_v56 = vld [vmem:[#allocation5 + $0x10c] ss:$16 sps:$4 sm:$0xff]  }
 0xd3b   : > { %v4314_v58 = vpop.f32.mrb[35].mxu0  ;;  %v2522_v59 = vsel %vm1047_vm3, %v2517_v55, -inf  ;;  %v4633_v57 = vld [vmem:[#allocation5 + $0x124] ss:$16 sps:$4 sm:$0xff]  }
 0xd3c   : > { %2523 = vmax.xlane.f32.xlu0 %v2522_v59  ;;  %v4636_v58 = vld [vmem:[#allocation5 + $0x12c] ss:$16 sps:$4 sm:$0xff]   ;;  %v4631_v59 = vld [vmem:[#allocation5 + $0x120] ss:$16 sps:$4 sm:$0xff]  }
 0xd56   : > { %v2413_v60 = vpop.xlane.xlu1 %2412 }
 0xd57   : > { %v2414_v61 = vsub.f32 %v2406_v50, %v2413_v60  ;;  %v4634_v60 = vld [vmem:[#allocation5 + $0x128] ss:$16 sps:$4 sm:$0xff]  }
 0xd59   : > { %v2415_v62 = vmul.f32 1.442695, %v2414_v61  ;;  %v4639_v61 = vld [vmem:[#allocation5 + $0x144] ss:$16 sps:$4 sm:$0xff]  }
 0xd5b   : > { %4743 = vpow2.f32 %v2415_v62  ;;  %v4642_v62 = vld [vmem:[#allocation5 + $0x14c] ss:$16 sps:$4 sm:$0xff]  }
 0xd65   : > { %v4744_v63 = vpop.eup %4743 }
 0xd66   : > { %v2417_v0 = vsel %vm1047_vm3, %v4744_v63, 0.0 }
 0xd67   : > { %2418 = vadd.xlane.f32.xlu1 %v2417_v0 }
 0xdc9   : > { %v2524_v1 = vpop.xlane.xlu0 %2523 }
 0xdca   : > { %v2525_v2 = vsub.f32 %v2517_v55, %v2524_v1  ;;  %v4627_v55 = vld [vmem:[#allocation5 + $0x104] ss:$16 sps:$4 sm:$0xff]  }
 0xdcb   : > { %2974 = vmatprep.subr.bf16.mxu0 %v4627_v55  ;;  %v4686_v55 = vld [vmem:[#allocation7 + $0x1d8] sm:$0xff]  }
 0xdcc   : > { %v2526_v3 = vmul.f32 1.442695, %v2525_v2 }
 0xdce   : > { %4745 = vpow2.f32 %v2526_v3 }
 0xdd8   : > { %v4746_v6 = vpop.eup %4745 }
 0xdd9   : > { %v2528_v10 = vsel %vm1047_vm3, %v4746_v6, 0.0 }
 0xdda   : > { %2529 = vadd.xlane.f32.xlu1 %v2528_v10  ;;  %v4648_v10 = vld [vmem:[#allocation5 + $0x16c] ss:$16 sps:$4 sm:$0xff]  }
 0xdeb   : > { %2535 = vrot.lane.b32.xlu1 %v2364_v34, %s4933_s19  ;;  %s674_s19 = scalar_lea.vmem [#allocation8], %s673_s30 }
 0xdec   : > { %s3682_s24 = sshll.u32 %s674_s19, 4  ;;  %s5536_s24 = int_to_ptr.vmem [resolvable:$true] %s3682_s24 }
 0xded   : > { %s4849_s2 = scalar_lea.vmem %s5536_s24, 16  ;;  %p4856_p4 = scmp.lt.s32.totalorder %s5536_s24, %s4854_s17 }
 0xdee   : > { %p4850_p12 = scmp.ne.s32.totalorder %s5536_s24, %s4849_s2  ;;  %p4857_p7 = scmp.lt.s32.totalorder %s4855_s22, %s4849_s2 }
 0xdf0   : > { %p4851_p2 = pnand %p4850_p12, %p5649_p1  ;;  %p4858_p8 = por %p4857_p7, %p4856_p4 }
 0xdf2   : > { %p4852_p3 = pneg %p4851_p2 }
 0xdf4   : > { %v2419_v7 = vpop.xlane.xlu1 %2418  ;;  %p4859_p11 = pnand %p4858_p8, %p4852_p3 }
 0xdf5   : > { %4747 = vrcp.f32 %v2419_v7  ;;  %v4643_v7 = vld [vmem:[#allocation5 + $0x160] ss:$16 sps:$4 sm:$0xff]  }
 0xdff   : > { %v4748_v8 = vpop.eup %4747 }
 0xe00   : > { %v2421_v9 = vmul.f32 %v4748_v8, %v4744_v63  ;;  %v4637_v63 = vld [vmem:[#allocation5 + $0x140] ss:$16 sps:$4 sm:$0xff]   ;;  %v4646_v8 = vld [vmem:[#allocation5 + $0x168] ss:$16 sps:$4 sm:$0xff]  }
 0xe02   : > { %v2422_v11 = vpack.c.bf16 %v2421_v9, %v2421_v9  ;;  %v4651_v9 = vld [vmem:[#allocation5 + $0x184] ss:$16 sps:$4 sm:$0xff]  }
 0xe04   : > { %4306 = vmatmul.mubr.msk.bf16.vlgmr.msra.gmra.mrb[28].mxu1 %vm1047_vm3, %v2422_v11  ;;  %v4654_v11 = vld [vmem:[#allocation5 + $0x18c] ss:$16 sps:$4 sm:$0xff]  }
 0xe05   : > { %4317 = vmatprep.mubr.msk.bf16.mxu1 %vm4932_vm0, %v4930_v4 }
 0xe67   : > { %v2530_v15 = vpop.xlane.xlu1 %2529 }
 0xe68   : > { %4749 = vrcp.f32 %v2530_v15  ;;  %v4660_v15 = vld [vmem:[#allocation5 + $0x1ac] ss:$16 sps:$4 sm:$0xff]  }
 0xe6b   : > { %v2536_v16 = vpop.permute.xlu1 %2535 }
 0xe6c   : > { %v2541_v17 = vsel %vm1063_vm1, %v2536_v16, 0  ;;  %v4655_v16 = vld [vmem:[#allocation5 + $0x1a0] ss:$16 sps:$4 sm:$0xff]  }
 0xe6d   : > { %4316 = vmatpush3.bf16.msra.mxu1 %v2541_v17  ;;  %v4658_v17 = vld [vmem:[#allocation5 + $0x1a8] ss:$16 sps:$4 sm:$0xff]  }
 0xe6e   : > { %4333 = vmatprep.subr.bf16.mxu1 %v4930_v4 }
 0xe72   : > { %v4750_v19 = vpop.eup %4749 }
 0xe73   : > { %v2532_v20 = vmul.f32 %v4750_v19, %v4746_v6  ;;  %v4645_v6 = vld [vmem:[#allocation5 + $0x164] ss:$16 sps:$4 sm:$0xff]  }
 0xe74   : > { %v4663_v19 = vld [vmem:[#allocation5 + $0x1c4] ss:$16 sps:$4 sm:$0xff]  }
 0xe75   : > { %v2533_v22 = vpack.c.bf16 %v2532_v20, %v2532_v20  ;;  %v4666_v20 = vld [vmem:[#allocation5 + $0x1cc] ss:$16 sps:$4 sm:$0xff]  }
 0xe77   : > { %4318 = vmatmul.mubr.msk.bf16.vlgmr.msra.gmra.mrb[32].mxu1 %vm1047_vm3, %v2533_v22  ;;  %v4664_v22 = vld [vmem:[#allocation5 + $0x1c8] ss:$16 sps:$4 sm:$0xff]  }
 0xe78   : > { %4334 = vmatpush3.bf16.msra.mxu1 %v4617_v21  ;;  %4341 = vmatprep.mubr.msk.bf16.mxu1 %vm4932_vm0, %v4930_v4  ;;  %v4661_v21 = vld [vmem:[#allocation5 + $0x1c0] ss:$16 sps:$4 sm:$0xff]  }
 0xe79   : > { %4335 = vmatprep.subr.bf16.mxu1 %v4930_v4 }
 0xe7c   : > { %4336 = vmatpush3.bf16.msra.mxu1 %v4618_v23  ;;  %v4669_v23 = vld [vmem:[#allocation5 + $0x1e4] ss:$16 sps:$4 sm:$0xff]  }
 0xe7d   : > { %4337 = vmatprep.subr.bf16.mxu1 %v4930_v4 }
 0xe80   : > { %4338 = vmatpush3.bf16.msra.mxu1 %v4619_v24  ;;  %v4672_v24 = vld [vmem:[#allocation5 + $0x1ec] ss:$16 sps:$4 sm:$0xff]  }
 0xe81   : > { %4339 = vmatprep.subr.bf16.mxu1 %v4930_v4 }
 0xe84   : > { %4340 = vmatpush3.bf16.msra.mxu1 %v4620_v25  ;;  %v4667_v25 = vld [vmem:[#allocation5 + $0x1e0] ss:$16 sps:$4 sm:$0xff]  }
 0xe85   : > { %3015 = vmatprep.subr.bf16.mxu1 %v4630_v56  ;;  %v4688_v56 = vld [vmem:[#allocation7 + $0x198] sm:$0xff]  }
 0xed7   : > { %v2463_v28 = vpop.f32.mrb[28].mxu1 }
 0xed8   : > { %v2469_v40 = vpack.c.bf16 %v2463_v28, %v2463_v28  ;;  %v4307_v29 = vpop.f32.mrb[29].mxu1  ;;  %v4673_v28 = vld [vmem:[#allocation7 + $0x140] sm:$0xff]  }
 0xed9   : > { %v2466_v30 = vpop.f32.mrb[30].mxu1 }
 0xeda   : > { %v4308_v31 = vpop.f32.mrb[31].mxu1  ;;  %4342 = vmatmul.mubr.msk.bf16.vlgmr.msra.gmra.mrb[36].mxu1 %vm1000_vm2, %v2469_v40  ;;  %v4674_v40 = vld [vmem:[#allocation7 + $0x1c0] sm:$0xff]  }
 0xedb   : > { %3047 = vmatprep.mubr.bf16.mxu1 %v4931_v26 }
 0xf4a   : > { %v2577_v32 = vpop.f32.mrb[32].mxu1 }
 0xf4b   : > { %v2583_v33 = vpack.c.bf16 %v2577_v32, %v2577_v32  ;;  %v4319_v34 = vpop.f32.mrb[33].mxu1 }
 0xf4c   : > { %v2580_v35 = vpop.f32.mrb[34].mxu1 }
 0xf4d   : > { %v4320_v36 = vpop.f32.mrb[35].mxu1  ;;  %4330 = vmatmul.mubr.msk.bf16.vlgmr.msra.gmra.mrb[36].mxu0 %vm1000_vm2, %v2583_v33  ;;  %v3957_v33 = vld [vmem:[%s5584_s8 + $0x1] ss:$0 sm:$0xff] }
 0xf4e   : > { %3006 = vmatprep.mubr.bf16.mxu0 %v4931_v26  ;;  %v4628_v26 = vld [vmem:[#allocation5 + $0x108] ss:$16 sps:$4 sm:$0xff]   ;;  %2975 = vmatpush1.bf16.msra.mxu0 %v4625_v54  ;;  %v3958_v35 = vld [vmem:[%s5585_s9 + $0x1] ss:$0 sm:$0xff] }
 0xf4f   : > { %3016 = vmatpush1.bf16.msra.mxu1 %v4628_v26  ;;  %2976 = vmatprep.subr.bf16.mxu0 %v4633_v57  ;;  %v4685_v54 = vld [vmem:[#allocation7 + $0x158] sm:$0xff]   ;;  %v4689_v57 = vld [vmem:[#allocation7 + $0x160] sm:$0xff]  }
 0xf50   : > { %3017 = vmatprep.subr.bf16.mxu1 %v4636_v58  ;;  %v4687_v26 = vld [vmem:[#allocation7 + $0x118] sm:$0xff]   ;;  %v4690_v58 = vld [vmem:[#allocation7 + $0x1e0] sm:$0xff]  }
 0xf52   : > { %2977 = vmatpush1.bf16.msra.mxu0 %v4631_v59  ;;  %v4691_v59 = vld [vmem:[#allocation7 + $0x120] sm:$0xff]  }
 0xf53   : > { %3018 = vmatpush1.bf16.msra.mxu1 %v4634_v60  ;;  %2978 = vmatprep.subr.bf16.mxu0 %v4639_v61  ;;  %v4692_v60 = vld [vmem:[#allocation7 + $0x1a0] sm:$0xff]   ;;  %v4693_v61 = vld [vmem:[#allocation7 + $0x168] sm:$0xff]  }
 0xf54   : > { %3019 = vmatprep.subr.bf16.mxu1 %v4642_v62  ;;  %v4694_v62 = vld [vmem:[#allocation7 + $0x1e8] sm:$0xff]  }
 0xf56   : > { %2979 = vmatpush1.bf16.msra.mxu0 %v4637_v63  ;;  %v4695_v63 = vld [vmem:[#allocation7 + $0x128] sm:$0xff]  }
 0xf57   : > { %2980 = vmatprep.subr.bf16.mxu0 %v4645_v6  ;;  %v4701_v6 = vld [vmem:[#allocation7 + $0x178] sm:$0xff]  }
 0xf5a   : > { %2981 = vmatpush1.bf16.msra.mxu0 %v4643_v7  ;;  %v4703_v7 = vld [vmem:[#allocation7 + $0x138] sm:$0xff]  }
 0xf5b   : > { %2982 = vmatprep.subr.bf16.mxu0 %v4651_v9  ;;  %v3959_v9 = vld [vmem:[%s5587_s11 + $0x4] sm:$0xf] }
 0xf5e   : > { %2983 = vmatpush1.bf16.msra.mxu0 %v4649_v12  ;;  %v2805_v12 = vrot.slane %v3959_v9, %v5216_v44 }
 0xf5f   : > { %2984 = vmatprep.subr.bf16.mxu0 %v4657_v14  ;;  %v2809_v14 = vrot.slane %v3959_v9, %v1441_v39 }
 0xf62   : > { %2985 = vmatpush1.bf16.msra.mxu0 %v4655_v16 }
 0xf63   : > { %2986 = vmatprep.subr.bf16.mxu0 %v4663_v19 }
 0xf66   : > { %2987 = vmatpush1.bf16.msra.mxu0 %v4661_v21 }
 0xf67   : > { %2988 = vmatprep.subr.bf16.mxu0 %v4669_v23 }
 0xf6a   : > { %2989 = vmatpush1.bf16.msra.mxu0 %v4667_v25 }
 0xf6b   : > { %4147 = vmatprep.subr.bf16.mxu0 %v4673_v28 }
 0xfad   : > { %v2712_v37 = vpop.f32.mrb[36].mxu1 }
 0xfae   : > { %v4343_v38 = vpop.f32.mrb[37].mxu1 }
 0xfaf   : > { %v2715_v41 = vpop.f32.mrb[38].mxu1  ;;  %v4675_v38 = vld [vmem:[#allocation7 + $0x100] sm:$0xff]  }
 0xfb0   : > { %v4344_v42 = vpop.f32.mrb[39].mxu1  ;;  %v4676_v41 = vld [vmem:[#allocation7 + $0x180] sm:$0xff]  }
0x1020   : > { %v2645_v45 = vpop.f32.mrb[36].mxu0 }
0x1021   : > { %v2713_v49 = vadd.f32 %v2712_v37, %v2645_v45  ;;  %v4331_v50 = vpop.f32.mrb[37].mxu0  ;;  %v4677_v45 = vld [vmem:[#allocation7 + $0x148] sm:$0xff]  }
0x1022   : > { %v2648_v51 = vpop.f32.mrb[38].mxu0  ;;  %v4680_v50 = vld [vmem:[#allocation7 + $0x188] sm:$0xff]  }
0x1023   : > { %v2726_v5 = vadd.f32 %v3954_v48, %v2713_v49  ;;  %v4332_v52 = vpop.f32.mrb[39].mxu0  ;;  %v4678_v48 = vld [vmem:[#allocation7 + $0x1c8] sm:$0xff]   ;;  %v4681_v51 = vld [vmem:[#allocation7 + $0x150] sm:$0xff]  }
0x1024   : > { %v4679_v49 = vld [vmem:[#allocation7 + $0x108] sm:$0xff]   ;;  %v4683_v52 = vld [vmem:[#allocation7 + $0x110] sm:$0xff]  }
0x1025   : > { %v2727_v53 = vadd.f32 %v2726_v5, %v5346_v18  ;;  %v4640_v18 = vld [vmem:[#allocation5 + $0x148] ss:$16 sps:$4 sm:$0xff]   ;;  %v4682_v5 = vld [vmem:[#allocation7 + $0x1d0] sm:$0xff]  }
0x1026   : > { %3020 = vmatpush1.bf16.msra.mxu1 %v4640_v18  ;;  %v4696_v18 = vld [vmem:[#allocation7 + $0x1a8] sm:$0xff]  }
0x1027   : > { %2732 = vadd.xlane.f32.xlu0 %v2727_v53  ;;  %3021 = vmatprep.subr.bf16.mxu1 %v4648_v10  ;;  %v4702_v10 = vld [vmem:[#allocation7 + $0x1f8] sm:$0xff]  }
0x102a   : > { %3022 = vmatpush1.bf16.msra.mxu1 %v4646_v8  ;;  %v4704_v8 = vld [vmem:[#allocation7 + $0x1b8] sm:$0xff]  }
0x102b   : > { %3023 = vmatprep.subr.bf16.mxu1 %v4654_v11  ;;  %v2797_v11 = vrot.slane %v3959_v9, %v5225_v47 }
0x102e   : > { %3024 = vmatpush1.bf16.msra.mxu1 %v4652_v13  ;;  %v2801_v13 = vrot.slane %v3959_v9, %v5222_v46  ;;  %v4709_v9 = vld [vmem:[%s5592_s16 + $0x20] sm:$0xff]  }
0x102f   : > { %3025 = vmatprep.subr.bf16.mxu1 %v4660_v15 }
0x1032   : > { %3026 = vmatpush1.bf16.msra.mxu1 %v4658_v17 }
0x1033   : > { %3027 = vmatprep.subr.bf16.mxu1 %v4666_v20 }
0x1036   : > { %3028 = vmatpush1.bf16.msra.mxu1 %v4664_v22 }
0x1037   : > { %3029 = vmatprep.subr.bf16.mxu1 %v4672_v24 }
0x103a   : > { %3030 = vmatpush1.bf16.msra.mxu1 %v4670_v27 }
0x103b   : > { %4169 = vmatprep.subr.bf16.mxu1 %v4674_v40 }
0x10b4   : > { %v2733_v0 = vpop.xlane.xlu0 %2732 }
0x10b5   : > { %v2734_v1 = vmul.f32 0.0078125, %v2733_v0  ;;  %v4697_v0 = vld [vmem:[#allocation7 + $0x170] sm:$0xff]  }
0x10b7   : > { %v2735_v2 = vsub.f32 %v2727_v53, %v2734_v1  ;;  %v4684_v53 = vld [vmem:[#allocation7 + $0x190] sm:$0xff]  }
0x10b8   : > { %v4698_v1 = vld [vmem:[#allocation7 + $0x1f0] sm:$0xff]  }
0x10b9   : > { %v2736_v3 = vmul.f32 %v2735_v2, %v2735_v2 }
0x10bb   : > { %2737 = vadd.xlane.f32.xlu0 %v2736_v3  ;;  %v4700_v3 = vld [vmem:[#allocation7 + $0x1b0] sm:$0xff]  }
0x1148   : > { %v2738_v29 = vpop.xlane.xlu0 %2737 }
0x1149   : > { %v2739_v30 = vmul.f32 0.0078125, %v2738_v29 }
0x114b   : > { %v2740_v31 = vadd.f32 1e-12, %v2739_v30 }
0x114d   : > { %4751 = vrsqrt.f32 %v2740_v31 }
0x1157   : > { %v4752_v32 = vpop.eup %4751 }
0x1158   : > { %v2742_v34 = vmul.f32 %v4752_v32, %v2735_v2  ;;  %v4699_v2 = vld [vmem:[#allocation7 + $0x130] sm:$0xff]  }
0x115a   : > { %v2749_v36 = vmul.f32 %v3957_v33, %v2742_v34 }
0x115c   : > { %v5433_v37 = vadd.f32 %v3958_v35, %v2749_v36 }
0x115e   : > { %v2757_v42 = vpack.c.bf16 %v5433_v37, %v5433_v37 }
0x1160   : > { %3007 = vmatmul.mubr.bf16.vlgmr.msra.gmra.mrb[40].mxu0 %v2757_v42  ;;  %3048 = vmatmul.mubr.bf16.vlgmr.msra.gmra.mrb[40].mxu1 %v2757_v42 }
0x1161   : > { %4148 = vmatpush3.bf16.msra.mxu0 %v4675_v38  ;;  %4170 = vmatpush3.bf16.msra.mxu1 %v4676_v41 }
0x1162   : > { %4149 = vmatprep.subr.bf16.mxu0 %v4677_v45  ;;  %4171 = vmatprep.subr.bf16.mxu1 %v4678_v48 }
0x1165   : > { %4150 = vmatpush3.bf16.msra.mxu0 %v4679_v49  ;;  %4172 = vmatpush3.bf16.msra.mxu1 %v4680_v50 }
0x1166   : > { %4151 = vmatprep.subr.bf16.mxu0 %v4681_v51  ;;  %4173 = vmatprep.subr.bf16.mxu1 %v4682_v5 }
0x1169   : > { %4152 = vmatpush3.bf16.msra.mxu0 %v4683_v52  ;;  %4174 = vmatpush3.bf16.msra.mxu1 %v4684_v53 }
0x116a   : > { %4153 = vmatprep.subr.bf16.mxu0 %v4685_v54  ;;  %4175 = vmatprep.subr.bf16.mxu1 %v4686_v55  ;;  %v3993_v55 = vld [vmem:[%s5589_s13 + $0x1] ss:$0 sm:$0xff] }
0x116d   : > { %4154 = vmatpush3.bf16.msra.mxu0 %v4687_v26  ;;  %4176 = vmatpush3.bf16.msra.mxu1 %v4688_v56 }
0x116e   : > { %4155 = vmatprep.subr.bf16.mxu0 %v4689_v57  ;;  %4177 = vmatprep.subr.bf16.mxu1 %v4690_v58 }
0x1171   : > { %4156 = vmatpush3.bf16.msra.mxu0 %v4691_v59  ;;  %4178 = vmatpush3.bf16.msra.mxu1 %v4692_v60 }
0x1172   : > { %4157 = vmatprep.subr.bf16.mxu0 %v4693_v61  ;;  %4179 = vmatprep.subr.bf16.mxu1 %v4694_v62 }
0x1175   : > { %4158 = vmatpush3.bf16.msra.mxu0 %v4695_v63  ;;  %4180 = vmatpush3.bf16.msra.mxu1 %v4696_v18 }
0x1176   : > { %4159 = vmatprep.subr.bf16.mxu0 %v4697_v0  ;;  %4181 = vmatprep.subr.bf16.mxu1 %v4698_v1  ;;  %v4705_v1 = vld [vmem:[%s5592_s16] sm:$0xff]  }
0x1179   : > { %4160 = vmatpush3.bf16.msra.mxu0 %v4699_v2  ;;  %4182 = vmatpush3.bf16.msra.mxu1 %v4700_v3  ;;  %v4706_v2 = vld [vmem:[%s5592_s16 + $0x8] sm:$0xff]  }
0x117a   : > { %4161 = vmatprep.subr.bf16.mxu0 %v4701_v6  ;;  %4183 = vmatprep.subr.bf16.mxu1 %v4702_v10 }
0x117d   : > { %4162 = vmatpush3.bf16.msra.mxu0 %v4703_v7  ;;  %4184 = vmatpush3.bf16.msra.mxu1 %v4704_v8  ;;  %v4708_v8 = vld [vmem:[%s5592_s16 + $0x18] sm:$0xff]  }
0x117e   : > { %4345 = vmatprep.subr.bf16.mxu0 %v4930_v4  ;;  %4365 = vmatprep.subr.bf16.mxu1 %v4930_v4 }
0x1233   : > { %v3008_v15 = vpop.f32.mrb[40].mxu0  ;;  %v3049_v16 = vpop.f32.mrb[40].mxu1 }
0x1234   : > { %v3009_v17 = vadd.f32 %v3008_v15, %v2797_v11  ;;  %v3050_v19 = vadd.f32 %v3049_v16, %v2805_v12  ;;  %v3010_v20 = vpop.f32.mrb[41].mxu0  ;;  %v3051_v21 = vpop.f32.mrb[41].mxu1  ;;  %v4710_v11 = vld [vmem:[%s5592_s16 + $0x28] sm:$0xff]   ;;  %v4711_v12 = vld [vmem:[%s5592_s16 + $0x30] sm:$0xff]  }
0x1235   : > { %v3011_v22 = vadd.f32 %v3010_v20, %v2801_v13  ;;  %v3052_v23 = vadd.f32 %v3051_v21, %v2809_v14  ;;  %v3012_v24 = vpop.f32.mrb[42].mxu0  ;;  %v3053_v25 = vpop.f32.mrb[42].mxu1  ;;  %v4712_v13 = vld [vmem:[%s5592_s16 + $0x38] sm:$0xff]   ;;  %v4713_v14 = vld [vmem:[%s5594_s18] sm:$0xff]   ;;  %v4714_v15 = vld [vmem:[%s5594_s18 + $0x8] sm:$0xff]  }
0x1236   : > { %v3060_v27 = vmul.f32 0.70710677, %v3009_v17  ;;  %v3062_v28 = vmul.f32 0.70710677, %v3050_v19  ;;  %v3013_v44 = vpop.f32.mrb[43].mxu0  ;;  %v3054_v46 = vpop.f32.mrb[43].mxu1 }
0x1237   : > { %v3061_v47 = vmul.f32 0.70710677, %v3011_v22  ;;  %v3063_v40 = vmul.f32 0.70710677, %v3052_v23  ;;  %v3056_v31 = vmul.f32 0.5, %v3009_v17  ;;  %v3058_v34 = vmul.f32 0.5, %v3050_v19 }
0x1238   : > { %4753 = verf.f32 %v3060_v27  ;;  %v3057_v35 = vmul.f32 0.5, %v3011_v22  ;;  %v3059_v41 = vmul.f32 0.5, %v3052_v23  ;;  %v4715_v16 = vld [vmem:[%s5594_s18 + $0x10] sm:$0xff]   ;;  %v4716_v17 = vld [vmem:[%s5594_s18 + $0x18] sm:$0xff]   ;;  %v4028_v23 = vld [vmem:[%s5590_s14 + $0x1] ss:$0 sm:$0xff] }
0x1239   : > { %4755 = verf.f32 %v3062_v28  ;;  %v4029_v25 = vld [vmem:[%s5591_s15 + $0x1] ss:$0 sm:$0xff]  ;;  %v4718_v44 = vld [vmem:[%s5594_s18 + $0x28] sm:$0xff]   ;;  %v4719_v46 = vld [vmem:[%s5594_s18 + $0x30] sm:$0xff]  }
0x123a   : > { %4757 = verf.f32 %v3061_v47 }
0x123b   : > { %4759 = verf.f32 %v3063_v40  ;;  %v4717_v40 = vld [vmem:[%s5594_s18 + $0x20] sm:$0xff]  }
0x1242   : > { %v4754_v43 = vpop.eup %4753 }
0x1243   : > { %v4756_v39 = vpop.eup %4755  ;;  %v3068_v29 = vadd.f32 1.0, %v4754_v43  ;;  %v4720_v43 = vld [vmem:[%s5594_s18 + $0x38] sm:$0xff]  }
0x1244   : > { %v4758_v30 = vpop.eup %4757  ;;  %v3070_v32 = vadd.f32 1.0, %v4756_v39  ;;  %v3472_v39 = vld [vmem:[%s5645_s10] sm:$0x1] }
0x1245   : > { %v4760_v33 = vpop.eup %4759  ;;  %v3069_v36 = vadd.f32 1.0, %v4758_v30  ;;  %v3072_v38 = vmul.f32 %v3068_v29, %v3056_v31 }
0x1246   : > { %v3071_v42 = vadd.f32 1.0, %v4760_v33  ;;  %v3074_v45 = vmul.f32 %v3070_v32, %v3058_v34 }
0x1247   : > { %v3073_v48 = vmul.f32 %v3069_v36, %v3057_v35  ;;  %v3076_v51 = vpack.c.bf16 %v3072_v38, %v3072_v38 }
0x1248   : > { %v3075_v49 = vmul.f32 %v3071_v42, %v3059_v41  ;;  %v3078_v52 = vpack.c.bf16 %v3074_v45, %v3074_v45 }
0x1249   : > { %v3077_v50 = vpack.c.bf16 %v3073_v48, %v3073_v48 }
0x124a   : > { %v3079_v5 = vpack.c.bf16 %v3075_v49, %v3075_v49 }
0x124b   : > { %3377 = vmatprep.mubr.bf16.mxu0 %v3077_v50 }
0x124c   : > { %3417 = vmatprep.mubr.bf16.mxu1 %v3079_v5  ;;  %3378 = vmatmul.mubr.bf16.vlgmr.msra.gmra.mrb[44].mxu0 %v3076_v51 }
0x124d   : > { %3418 = vmatmul.mubr.bf16.vlgmr.msra.gmra.mrb[44].mxu1 %v3078_v52  ;;  %4361 = vmatprep.mubr.msk.bf16.mxu0 %vm4932_vm0, %v4930_v4 }
0x124e   : > { %4381 = vmatprep.mubr.msk.bf16.mxu1 %vm4932_vm0, %v4930_v4  ;;  %4346 = vmatpush3.bf16.msra.mxu0 %v4705_v1 }
0x124f   : > { %4347 = vmatprep.subr.bf16.mxu0 %v4930_v4  ;;  %4366 = vmatpush3.bf16.msra.mxu1 %v4713_v14 }
0x1250   : > { %4367 = vmatprep.subr.bf16.mxu1 %v4930_v4 }
0x1252   : > { %4348 = vmatpush3.bf16.msra.mxu0 %v4706_v2 }
0x1253   : > { %4349 = vmatprep.subr.bf16.mxu0 %v4930_v4  ;;  %4368 = vmatpush3.bf16.msra.mxu1 %v4714_v15 }
0x1254   : > { %4369 = vmatprep.subr.bf16.mxu1 %v4930_v4 }
0x1257   : > { %4370 = vmatpush3.bf16.msra.mxu1 %v4715_v16 }
0x1258   : > { %4371 = vmatprep.subr.bf16.mxu1 %v4930_v4 }
0x125b   : > { %4372 = vmatpush3.bf16.msra.mxu1 %v4716_v17 }
0x125c   : > { %4373 = vmatprep.subr.bf16.mxu1 %v4930_v4 }
0x125f   : > { %4374 = vmatpush3.bf16.msra.mxu1 %v4717_v40 }
0x1260   : > { %4375 = vmatprep.subr.bf16.mxu1 %v4930_v4 }
0x1263   : > { %4376 = vmatpush3.bf16.msra.mxu1 %v4718_v44 }
0x1264   : > { %4377 = vmatprep.subr.bf16.mxu1 %v4930_v4 }
0x1267   : > { %4378 = vmatpush3.bf16.msra.mxu1 %v4719_v46 }
0x1268   : > { %4379 = vmatprep.subr.bf16.mxu1 %v4930_v4 }
0x126b   : > { %4380 = vmatpush3.bf16.msra.mxu1 %v4720_v43 }
0x131f   : > { %v4163_v53 = vpop.f32.mrb[44].mxu0 }
0x1320   : > { %v4185_v54 = vpop.f32.mrb[44].mxu1  ;;  %v4164_v26 = vpop.f32.mrb[45].mxu0 }
0x1321   : > { %v4165_v56 = vadd.f32 %v4164_v26, %v4163_v53  ;;  %v4186_v57 = vpop.f32.mrb[45].mxu1  ;;  %v4166_v58 = vpop.f32.mrb[46].mxu0 }
0x1322   : > { %v4187_v59 = vadd.f32 %v4186_v57, %v4185_v54  ;;  %v4188_v60 = vpop.f32.mrb[46].mxu1  ;;  %v4167_v61 = vpop.f32.mrb[47].mxu0 }
0x1323   : > { %v3380_v62 = vadd.f32 %v4165_v56, %v3993_v55  ;;  %v4189_v63 = vpop.f32.mrb[47].mxu1 }
0x1325   : > { %v3420_v18 = vadd.f32 %v4187_v59, %v3380_v62 }
0x1327   : > { %v3425_v0 = vadd.f32 %v3420_v18, %v5433_v37  ;;  %v4707_v37 = vld [vmem:[%s5592_s16 + $0x10] sm:$0xff]  }
0x1328   : > { %4350 = vmatpush3.bf16.msra.mxu0 %v4707_v37 }
0x1329   : > { %3430 = vadd.xlane.f32.xlu0 %v3425_v0  ;;  %4351 = vmatprep.subr.bf16.mxu0 %v4930_v4 }
0x132c   : > { %4352 = vmatpush3.bf16.msra.mxu0 %v4708_v8 }
0x132d   : > { %4353 = vmatprep.subr.bf16.mxu0 %v4930_v4 }
0x1330   : > { %4354 = vmatpush3.bf16.msra.mxu0 %v4709_v9 }
0x1331   : > { %4355 = vmatprep.subr.bf16.mxu0 %v4930_v4 }
0x1334   : > { %4356 = vmatpush3.bf16.msra.mxu0 %v4710_v11 }
0x1335   : > { %4357 = vmatprep.subr.bf16.mxu0 %v4930_v4 }
0x1338   : > { %4358 = vmatpush3.bf16.msra.mxu0 %v4711_v12 }
0x1339   : > { %4359 = vmatprep.subr.bf16.mxu0 %v4930_v4  ;;  %v3579_v4 = vld [vmem:[%s5646_s4] sm:$0x1] }
0x133c   : > { %4360 = vmatpush3.bf16.msra.mxu0 %v4712_v13 }
0x13b6   : > { %v3431_v3 = vpop.xlane.xlu0 %3430 }
0x13b7   : > { %v3432_v6 = vmul.f32 0.0078125, %v3431_v3 }
0x13b9   : > { %v3433_v10 = vsub.f32 %v3425_v0, %v3432_v6 }
0x13bb   : > { %v3434_v7 = vmul.f32 %v3433_v10, %v3433_v10 }
0x13bd   : > { %3435 = vadd.xlane.f32.xlu1 %v3434_v7 }
0x144a   : > { %v3436_v19 = vpop.xlane.xlu1 %3435 }
0x144b   : > { %v3437_v20 = vmul.f32 0.0078125, %v3436_v19 }
0x144d   : > { %v3438_v21 = vadd.f32 1e-12, %v3437_v20 }
0x144f   : > { %4761 = vrsqrt.f32 %v3438_v21 }
0x1459   : > { %v4762_v22 = vpop.eup %4761 }
0x145a   : > { %v3440_v24 = vmul.f32 %v4762_v22, %v3433_v10 }
0x145c   : > { %v3447_v27 = vmul.f32 %v4028_v23, %v3440_v24 }
0x145e   : > { %v3454_v28 = vadd.f32 %v4029_v25, %v3447_v27 }
0x1460   : > { %v3455_v47 = vpack.c.bf16 %v3454_v28, %v3454_v28 }
0x1462   : > { %4362 = vmatmul.mubr.bf16.vlgmr.msra.gmra.mrb[48].mxu0 %v3455_v47 }
0x1535   : > { %v3555_v29 = vpop.f32.mrb[48].mxu0 }
0x1536   : > { %v3556_v30 = vadd.f32 %v3555_v29, %v3472_v39  ;;  %v4363_v31 = vpop.f32.mrb[49].mxu0 }
0x1537   : > { %v3558_v32 = vpop.f32.mrb[50].mxu0 }
0x1538   : > { %4763 = vtanh.f32 %v3556_v30  ;;  %v4364_v33 = vpop.f32.mrb[51].mxu0 }
0x1542   : > { %v4764_v34 = vpop.eup %4763 }
0x1543   : > { %v3562_v35 = vpack.c.bf16 %v4764_v34, %v4764_v34 }
0x1545   : > { %4382 = vmatmul.mubr.bf16.vlgmr.msra.gmra.mrb[48].mxu1 %v3562_v35 }
0x1618   : > { %v3662_v36 = vpop.f32.mrb[48].mxu1 }
0x1619   : > { %v3663_v38 = vadd.f32 %v3662_v36, %v3579_v4  ;;  %v4383_v41 = vpop.f32.mrb[49].mxu1 }
0x161a   : > { %v3665_v42 = vpop.f32.mrb[50].mxu1 }
0x161b   : > { %3668 = vst [vmem:[%s674_s19] sm:$0x1] %v3663_v38  ;;  %v4384_v45 = vpop.f32.mrb[51].mxu1 }
0x161c   : > { %4862 = shalt.err (!%p4859_p11)
}
0x161d   : > { %s4863_s10 = scalar_lea.hbm %s5534_s21, 16  ;;  %s4867_s25 = scalar_lea.hbm %s5648_s26, 32 }
0x161e   : > { %p4864_p13 = scmp.ne.s32.totalorder %s5534_s21, %s4863_s10  ;;  %p4868_p6 = scmp.lt.u32.totalorder %s5534_s21, %s5648_s26 }
0x161f   : > { %p4869_p9 = scmp.lt.u32.totalorder %s4867_s25, %s4863_s10  ;;  %p4871_p12 = scmp.lt.u32.totalorder %s4863_s10, %s5534_s21 }
0x1620   : > { %p4865_p5 = pnand %p4864_p13, %p5649_p1 }
0x1621   : > { %p4870_p10 = por %p4869_p9, %p4868_p6 }
0x1622   : > { %p4866_p0 = pneg %p4865_p5 }
0x1623   : > { %p4872_p2 = por %p4871_p12, %p4870_p10 }
0x1625   : > { %p4873_p3 = pnand %p4872_p2, %p4866_p0 }
0x1627   : > { %4876 = shalt.err (!%p4873_p3)
}
0x1628   : > { %4397 = dma.vmem_to_hbm [thread:$0]  (%p5649_p1), %s5536_s24, 16, %s5534_s21, %s3670_s23  }
0x1629 PF: > { %s5650_s19 = sld [smem:[#allocation15_spill]]  ;;  %s5651_s3 = sld [smem:[#allocation12_spill]] }
0x162a   : > { %s5652_s29 = sld [smem:[#allocation19_spill]] }
0x162f   : > { %p4419_p4 = scmp.ge.s32.totalorder %s5650_s19, 2  ;;  %s3694_s2 = sand.u32 1, %s5651_s3  }
0x1630   : > { %p5653_p7 = scmp.ne.s32.totalorder %s5652_s29, 0  ;;  %s3695_s27 = scalar_lea.sflag [#allocation4], %s3694_s2 }
0x1632   : > { %p4410_p8 = pnand %p4419_p4, %p5653_p7 }
0x1634   : > { %4902 = dma.done.wait (!%p4410_p8), %s3695_s27, 16  }
0x1635   : > { %4904 = vsyncadd (!%p4410_p8), %s3695_s27, 4294967280  ;;  %s5654_s24 = sld [smem:[#allocation16_spill]]  ;;  %s5655_s1 = sld [smem:[#allocation13_spill]] }
0x1636   : > { %s5656_s22 = sld [smem:[#allocation14_spill]]  ;;  %s5657_s23 = sld [smem:[#allocation17_spill]] }
0x163b   : > { %p32_p11 = scmp.ge.s32.totalorder %s5654_s24, 4  }
0x163d   :  { %34 = sbr.rel (!%p32_p11) target bundleno = 15 (0xf), region = 163 }
0x1644   :  { %3699 = vsyncpa [#allocation3], 1 }
0x1645   :  { %3701 = vsyncpa [#allocation3 + $0x1], 1 }
0x1646   :  { %3702 = vsyncpa [#allocation6], 1 }
0x1647   :  { %3703 = vsyncpa [#allocation4], 1 }
0x1648   :  { %3705 = vsyncpa [#allocation4 + $0x1], 1 }

</bundles_post_ra>
